<compile_context>
chip_gen: v6e
topology: v6e:2x2x1
jax: 0.10.0
libtpu: 0.0.40
codegen_flags: <defaults>
</compile_context>

<pallas_src>
import math

import jax
import jax.numpy as jnp
from jax.experimental import pallas as pl
from jax.experimental.pallas import tpu as pltpu

# ----------------------------- config -----------------------------
BATCH = 2
IN_CH = 3
IMG = 32
PATCH = 8
GRID_HW = IMG // PATCH                # 4
NUM_PATCHES = GRID_HW * GRID_HW       # 16
SEQ = NUM_PATCHES + 1                 # 17 (CLS token + patches)
HIDDEN = 128                          # lane-dense at the toy size (review item 7)
HEADS = 4
HEAD_DIM = HIDDEN // HEADS            # 32
MLP = 4 * HIDDEN                      # 512
LAYERS = 2
LN_EPS = 1e-6
STD = 0.02
CPP = IN_CH * PATCH * PATCH           # 192 (flattened patch)


# --------------------------- Pallas kernel ---------------------------
def _layer_norm(v, g, b):
    # Single-pass statistics: E[x] and E[x^2] are independent reductions (no dependent
    # second pass over (v - mu)), halving the serialized XLU reduce chain.
    mu = jnp.mean(v, axis=-1, keepdims=True)
    ms = jnp.mean(v * v, axis=-1, keepdims=True)
    var = ms - mu * mu
    return (v - mu) * jax.lax.rsqrt(var + LN_EPS) * g + b


def _vit_kernel(patch_ref, pe_w_ref, pe_b_ref, cls_ref, pos_ref,
                g1_ref, b1_ref, qkvw_ref, qkvb_ref, pw_ref, pb_ref, ls1_ref,
                g2_ref, b2_ref, f1w_ref, f1b_ref, f2w_ref, f2b_ref, ls2_ref,
                o_ref, x_scratch):
    """One (batch, layer) grid step.  Hidden state is resident in x_scratch (VMEM)."""
    layer = pl.program_id(1)

    # ---- embeddings: patch matmul (Conv2d with kernel==stride) + CLS + pos, layer 0 only ----
    @pl.when(layer == 0)
    def _():
        emb = jnp.dot(patch_ref[...], pe_w_ref[...],
                      preferred_element_type=jnp.float32) + pe_b_ref[...]
        # TODO(synk): real InternVisionEmbeddings bicubic-interpolates the position
        # embedding when the input resolution differs from the config; sizes match here.
        x_scratch[...] = jnp.concatenate([cls_ref[...], emb], axis=0) + pos_ref[...]

    x = x_scratch[...]                                                # (SEQ, HIDDEN) f32

    # ---- attention branch: x + ls1 * proj(MHSA(LN1(x))) ----
    h = _layer_norm(x, g1_ref[...], b1_ref[...]).astype(jnp.bfloat16)
    # One lane-dense QKV matmul (output width 3*HIDDEN fills the MXU lanes).
    qkv = jnp.dot(h, qkvw_ref[...], preferred_element_type=jnp.float32) + qkvb_ref[...]
    q2d = qkv[:, :HIDDEN]            # Q already carries the 1/sqrt(HEAD_DIM) scale
    k2d = qkv[:, HIDDEN:2 * HIDDEN]  # (folded into the Q weight/bias in the wrapper).
    v2d = qkv[:, 2 * HIDDEN:]

    # Heads are split only here (static lane slices).  At production head counts this
    # unrolled loop can become a single head-batched dot_general after an einshape
    # relayout; the per-head working set here is one (S, S) score block, not (H, S, S).
    ctx_heads = []
    for hd in range(HEADS):
        sl = slice(hd * HEAD_DIM, (hd + 1) * HEAD_DIM)
        q_h = q2d[:, sl].astype(jnp.bfloat16)
        k_h = k2d[:, sl].astype(jnp.bfloat16)
        v_h = v2d[:, sl].astype(jnp.bfloat16)
        s = jax.lax.dot_general(q_h, k_h, (((1,), (1,)), ((), ())),
                                preferred_element_type=jnp.float32)   # (S, S)
        s = s - jnp.max(s, axis=-1, keepdims=True)
        p = jnp.exp(s)
        denom = jnp.sum(p, axis=-1, keepdims=True)                    # (S, 1)
        ctx = jnp.dot(p.astype(jnp.bfloat16), v_h,
                      preferred_element_type=jnp.float32)             # (S, HEAD_DIM)
        ctx_heads.append(ctx * pl.reciprocal(denom, approx=True))
    ctx2d = jnp.concatenate(ctx_heads, axis=-1).astype(jnp.bfloat16)  # (S, HIDDEN)

    # Single lane-dense output projection (no (H, S, HIDDEN) intermediate, no head-sum).
    attn_out = jnp.dot(ctx2d, pw_ref[...],
                       preferred_element_type=jnp.float32) + pb_ref[...]
    x = x + attn_out * ls1_ref[...]

    # ---- MLP branch: x + ls2 * fc2(gelu(fc1(LN2(x)))) ----
    h2 = _layer_norm(x, g2_ref[...], b2_ref[...]).astype(jnp.bfloat16)
    f = jnp.dot(h2, f1w_ref[...], preferred_element_type=jnp.float32) + f1b_ref[...]
    # TODO(synk): HF GELUActivation is the exact erf GELU; tanh-approximate GELU is used
    # here because erf has no guaranteed Mosaic lowering.  On v6e/v7x this could run bf16.
    f = jax.nn.gelu(f, approximate=True)
    m = jnp.dot(f.astype(jnp.bfloat16), f2w_ref[...],
                preferred_element_type=jnp.float32) + f2b_ref[...]
    x = x + m * ls2_ref[...]

    x_scratch[...] = x

    @pl.when(layer == pl.num_programs(1) - 1)
    def _():
        # TODO(synk): emit bf16 here if downstream accepts it (halves HBM writeback).
        o_ref[...] = x.astype(o_ref.dtype)


# --------------------------- wrapper ---------------------------
def _extract_patches(pixel_values):
    # Conv2d(kernel=stride=PATCH) == per-patch flatten + matmul.
    B, C, H, W = pixel_values.shape
    x = pixel_values.reshape(B, C, GRID_HW, PATCH, GRID_HW, PATCH)
    x = x.transpose(0, 2, 4, 1, 3, 5)                               # (B, gh, gw, C, P, P)
    return x.reshape(B, NUM_PATCHES, C * PATCH * PATCH)


def _pack_kernel_params(params):
    """Stack per-layer weights over a leading LAYERS axis, fold the attention scale into
    the Q columns of the fused QKV weight/bias, and cast MXU weights to bf16."""
    scale = 1.0 / math.sqrt(HEAD_DIM)
    keys = ("g1", "b1", "qkv_w", "qkv_b", "pw", "pb", "ls1",
            "g2", "b2", "f1w", "f1b", "f2w", "f2b", "ls2")
    stacks = {k: [] for k in keys}
    for lp in params["layers"]:
        stacks["qkv_w"].append(lp["qkv_w"].at[:, :HIDDEN].multiply(scale))
        stacks["qkv_b"].append(lp["qkv_b"].at[:, :HIDDEN].multiply(scale))
        stacks["pw"].append(lp["proj_w"]); stacks["pb"].append(lp["proj_b"])
        stacks["g1"].append(lp["g1"]); stacks["b1"].append(lp["b1"])
        stacks["ls1"].append(lp["ls1"])
        stacks["g2"].append(lp["g2"]); stacks["b2"].append(lp["b2"])
        stacks["f1w"].append(lp["fc1_w"]); stacks["f1b"].append(lp["fc1_b"])
        stacks["f2w"].append(lp["fc2_w"]); stacks["f2b"].append(lp["fc2_b"])
        stacks["ls2"].append(lp["ls2"])

    bf16_keys = {"qkv_w", "pw", "f1w", "f2w"}
    kp = {}
    for k in keys:
        arr = jnp.stack(stacks[k], axis=0)
        kp[k] = arr.astype(jnp.bfloat16) if k in bf16_keys else arr

    kp["pe_w"] = params["patch_w"].reshape(HIDDEN, -1).T.astype(jnp.bfloat16)  # (CPP, HIDDEN)
    kp["pe_b"] = params["patch_b"]
    kp["cls"] = params["cls"]
    kp["pos"] = params["pos"]
    return kp


def intern_vl3_vision_encoder(pixel_values, params):
    """Returns last_hidden_state of shape (B, SEQ, HIDDEN) (no final LayerNorm,
    matching InternVisionModel.last_hidden_state)."""
    # Pre-cast patches to bf16 in the wrapper (review item 6): halves the DMA bytes and
    # the resident VMEM footprint of an input that is only consumed at layer == 0.
    patches = _extract_patches(pixel_values).astype(jnp.bfloat16)     # (B, NP, CPP)
    kp = _pack_kernel_params(params)

    def const_spec(arr):
        zeros = (0,) * arr.ndim
        return pl.BlockSpec(arr.shape, lambda b, l, _z=zeros: _z)

    def layer_spec(arr):
        zeros = (0,) * (arr.ndim - 1)
        return pl.BlockSpec((None,) + arr.shape[1:], lambda b, l, _z=zeros: (l,) + _z)

    inputs = (patches, kp["pe_w"], kp["pe_b"], kp["cls"], kp["pos"],
              kp["g1"], kp["b1"], kp["qkv_w"], kp["qkv_b"], kp["pw"], kp["pb"], kp["ls1"],
              kp["g2"], kp["b2"], kp["f1w"], kp["f1b"], kp["f2w"], kp["f2b"], kp["ls2"])

    in_specs = [pl.BlockSpec((None, NUM_PATCHES, CPP), lambda b, l: (b, 0, 0))]
    in_specs += [const_spec(kp[k]) for k in ("pe_w", "pe_b", "cls", "pos")]
    in_specs += [layer_spec(kp[k]) for k in ("g1", "b1", "qkv_w", "qkv_b", "pw", "pb",
                                             "ls1", "g2", "b2", "f1w", "f1b",
                                             "f2w", "f2b", "ls2")]

    return pl.pallas_call(
        _vit_kernel,
        out_shape=jax.ShapeDtypeStruct((BATCH, SEQ, HIDDEN), jnp.float32),
        grid=(BATCH, LAYERS),
        in_specs=in_specs,
        out_specs=pl.BlockSpec((None, SEQ, HIDDEN), lambda b, l: (b, 0, 0)),
        scratch_shapes=[pltpu.VMEM((SEQ, HIDDEN), jnp.float32)],
        compiler_params=pltpu.CompilerParams(
            dimension_semantics=("parallel", "arbitrary"),
            # TODO(synk): tune per generation at production shapes (raise on v6e/v5e,
            # keep tight + tile MLP/KV on v7x); trivial at this synthetic size.
            vmem_limit_bytes=32 * 1024 * 1024),
    )(*inputs)


# --------------------------- params & reference ---------------------------
def init_params(key):
    keys = jax.random.split(key, 4 + LAYERS)
    params = {
        "patch_w": STD * jax.random.normal(keys[0], (HIDDEN, IN_CH, PATCH, PATCH), jnp.float32),
        "patch_b": STD * jax.random.normal(keys[1], (1, HIDDEN), jnp.float32),
        "cls": STD * jax.random.normal(keys[2], (1, HIDDEN), jnp.float32),
        "pos": STD * jax.random.normal(keys[3], (SEQ, HIDDEN), jnp.float32),
        "layers": [],
    }
    for li in range(LAYERS):
        k = jax.random.split(keys[4 + li], 8)
        params["layers"].append(dict(
            g1=jnp.ones((1, HIDDEN), jnp.float32),
            b1=jnp.zeros((1, HIDDEN), jnp.float32),
            qkv_w=STD * jax.random.normal(k[0], (HIDDEN, 3 * HIDDEN), jnp.float32),
            qkv_b=STD * jax.random.normal(k[1], (1, 3 * HIDDEN), jnp.float32),
            proj_w=STD * jax.random.normal(k[2], (HIDDEN, HIDDEN), jnp.float32),
            proj_b=STD * jax.random.normal(k[3], (1, HIDDEN), jnp.float32),
            ls1=0.1 * jnp.ones((1, HIDDEN), jnp.float32),
            g2=jnp.ones((1, HIDDEN), jnp.float32),
            b2=jnp.zeros((1, HIDDEN), jnp.float32),
            fc1_w=STD * jax.random.normal(k[4], (HIDDEN, MLP), jnp.float32),
            fc1_b=STD * jax.random.normal(k[5], (1, MLP), jnp.float32),
            fc2_w=STD * jax.random.normal(k[6], (MLP, HIDDEN), jnp.float32),
            fc2_b=STD * jax.random.normal(k[7], (1, HIDDEN), jnp.float32),
            ls2=0.1 * jnp.ones((1, HIDDEN), jnp.float32),
        ))
    return params


def reference_forward(pixel_values, params):
    """Plain-JAX f32 reference of the same math (for a sanity check)."""
    def ln(v, g, b):
        mu = jnp.mean(v, axis=-1, keepdims=True)
        var = jnp.mean(jnp.square(v - mu), axis=-1, keepdims=True)
        return (v - mu) * jax.lax.rsqrt(var + LN_EPS) * g + b

    patches = _extract_patches(pixel_values)
    w = params["patch_w"].reshape(HIDDEN, -1).T
    emb = patches @ w + params["patch_b"][None]
    cls = jnp.broadcast_to(params["cls"][None], (BATCH, 1, HIDDEN))
    x = jnp.concatenate([cls, emb], axis=1) + params["pos"][None]

    for lp in params["layers"]:
        h = ln(x, lp["g1"][0], lp["b1"][0])
        qkv = h @ lp["qkv_w"] + lp["qkv_b"][0]
        q, k_, v = jnp.split(qkv, 3, axis=-1)
        split = lambda t: t.reshape(BATCH, SEQ, HEADS, HEAD_DIM).transpose(0, 2, 1, 3)
        q, k_, v = split(q), split(k_), split(v)
        s = jnp.einsum("bhqd,bhkd->bhqk", q, k_) / math.sqrt(HEAD_DIM)
        p = jax.nn.softmax(s, axis=-1)
        ctx = jnp.einsum("bhqk,bhkd->bhqd", p, v).transpose(0, 2, 1, 3).reshape(BATCH, SEQ, HIDDEN)
        x = x + (ctx @ lp["proj_w"] + lp["proj_b"][0]) * lp["ls1"][0]
        h2 = ln(x, lp["g2"][0], lp["b2"][0])
        f = jax.nn.gelu(h2 @ lp["fc1_w"] + lp["fc1_b"][0], approximate=True)
        x = x + (f @ lp["fc2_w"] + lp["fc2_b"][0]) * lp["ls2"][0]
    return x


# --------------------------- main ---------------------------
if __name__ == "__main__":
    key = jax.random.PRNGKey(0)
    pkey, xkey = jax.random.split(key)
    params = init_params(pkey)
    pixel_values = jax.random.normal(xkey, (BATCH, IN_CH, IMG, IMG), jnp.float32)

    out = intern_vl3_vision_encoder(pixel_values, params)
    out = jax.block_until_ready(out)

    assert out.shape == (BATCH, SEQ, HIDDEN), out.shape
    assert bool(jnp.all(jnp.isfinite(out)))
    ref = reference_forward(pixel_values, params)
    assert bool(jnp.allclose(out, ref, rtol=5e-2, atol=5e-2)), float(jnp.max(jnp.abs(out - ref)))

    print("KERNEL_OK")
</pallas_src>

<mosaic_0001>
module attributes {stable_mosaic.version = 11 : i64} {
  func.func @_vit_kernel(%arg0: i32, %arg1: i32, %arg2: memref<1x16x192xbf16, #tpu.memory_space<vmem>>, %arg3: memref<192x128xbf16, #tpu.memory_space<vmem>>, %arg4: memref<1x128xf32, #tpu.memory_space<vmem>>, %arg5: memref<1x128xf32, #tpu.memory_space<vmem>>, %arg6: memref<17x128xf32, #tpu.memory_space<vmem>>, %arg7: memref<1x1x128xf32, #tpu.memory_space<vmem>>, %arg8: memref<1x1x128xf32, #tpu.memory_space<vmem>>, %arg9: memref<1x128x384xbf16, #tpu.memory_space<vmem>>, %arg10: memref<1x1x384xf32, #tpu.memory_space<vmem>>, %arg11: memref<1x128x128xbf16, #tpu.memory_space<vmem>>, %arg12: memref<1x1x128xf32, #tpu.memory_space<vmem>>, %arg13: memref<1x1x128xf32, #tpu.memory_space<vmem>>, %arg14: memref<1x1x128xf32, #tpu.memory_space<vmem>>, %arg15: memref<1x1x128xf32, #tpu.memory_space<vmem>>, %arg16: memref<1x128x512xbf16, #tpu.memory_space<vmem>>, %arg17: memref<1x1x512xf32, #tpu.memory_space<vmem>>, %arg18: memref<1x512x128xbf16, #tpu.memory_space<vmem>>, %arg19: memref<1x1x128xf32, #tpu.memory_space<vmem>>, %arg20: memref<1x1x128xf32, #tpu.memory_space<vmem>>, %arg21: memref<1x17x128xf32, #tpu.memory_space<vmem>>, %arg22: memref<17x128xf32, #tpu.memory_space<vmem>>) attributes {dimension_semantics = [#tpu.dimension_semantics<parallel>, #tpu.dimension_semantics<arbitrary>], iteration_bounds = array<i64: 2, 2>, scalar_prefetch = 0 : i64, scratch_operands = 1 : i64, tpu.core_type = #tpu.core_type<tc>, window_params = [{transform_indices = @transform_0, window_bounds = array<i64: 1, 16, 192>}, {pipeline_mode = #tpu.pipeline_mode<synchronous>, transform_indices = @transform_1, window_bounds = array<i64: 192, 128>}, {pipeline_mode = #tpu.pipeline_mode<synchronous>, transform_indices = @transform_2, window_bounds = array<i64: 1, 128>}, {pipeline_mode = #tpu.pipeline_mode<synchronous>, transform_indices = @transform_3, window_bounds = array<i64: 1, 128>}, {pipeline_mode = #tpu.pipeline_mode<synchronous>, transform_indices = @transform_4, window_bounds = array<i64: 17, 128>}, {transform_indices = @transform_5, window_bounds = array<i64: 1, 1, 128>}, {transform_indices = @transform_6, window_bounds = array<i64: 1, 1, 128>}, {transform_indices = @transform_7, window_bounds = array<i64: 1, 128, 384>}, {transform_indices = @transform_8, window_bounds = array<i64: 1, 1, 384>}, {transform_indices = @transform_9, window_bounds = array<i64: 1, 128, 128>}, {transform_indices = @transform_10, window_bounds = array<i64: 1, 1, 128>}, {transform_indices = @transform_11, window_bounds = array<i64: 1, 1, 128>}, {transform_indices = @transform_12, window_bounds = array<i64: 1, 1, 128>}, {transform_indices = @transform_13, window_bounds = array<i64: 1, 1, 128>}, {transform_indices = @transform_14, window_bounds = array<i64: 1, 128, 512>}, {transform_indices = @transform_15, window_bounds = array<i64: 1, 1, 512>}, {transform_indices = @transform_16, window_bounds = array<i64: 1, 512, 128>}, {transform_indices = @transform_17, window_bounds = array<i64: 1, 1, 128>}, {transform_indices = @transform_18, window_bounds = array<i64: 1, 1, 128>}, {transform_indices = @transform_19, window_bounds = array<i64: 1, 17, 128>}]} {
    %c0_i32 = arith.constant 0 : i32
    %0 = arith.cmpi eq, %arg1, %c0_i32 : i32
    %1 = arith.extui %0 : i1 to i32
    %c0_i32_0 = arith.constant 0 : i32
    %2 = arith.cmpi ne, %1, %c0_i32_0 : i32
    scf.if %2 {
      %c0_80 = arith.constant 0 : index
      %c0_81 = arith.constant 0 : index
      %c0_82 = arith.constant 0 : index
      %195 = vector.load %arg2[%c0_80, %c0_81, %c0_82] : memref<1x16x192xbf16, #tpu.memory_space<vmem>>, vector<1x16x192xbf16>
      %196 = vector.shape_cast %195 : vector<1x16x192xbf16> to vector<16x192xbf16>
      %c0_83 = arith.constant 0 : index
      %c0_84 = arith.constant 0 : index
      %197 = vector.load %arg3[%c0_83, %c0_84] : memref<192x128xbf16, #tpu.memory_space<vmem>>, vector<192x128xbf16>
      %cst_85 = arith.constant dense<0.000000e+00> : vector<16x128xf32>
      %198 = tpu.matmul %196, %197, %cst_85 {dimension_numbers = #tpu.dot_dimension_numbers<[1], [0], [0], [1], [0, 0, 1, 1], [], []>} : vector<16x192xbf16>, vector<192x128xbf16>, vector<16x128xf32> -> vector<16x128xf32>
      %c0_86 = arith.constant 0 : index
      %c0_87 = arith.constant 0 : index
      %199 = vector.load %arg4[%c0_86, %c0_87] : memref<1x128xf32, #tpu.memory_space<vmem>>, vector<1x128xf32>
      %200 = vector.broadcast %199 : vector<1x128xf32> to vector<16x128xf32>
      %201 = arith.addf %198, %200 : vector<16x128xf32>
      %c0_88 = arith.constant 0 : index
      %c0_89 = arith.constant 0 : index
      %202 = vector.load %arg5[%c0_88, %c0_89] : memref<1x128xf32, #tpu.memory_space<vmem>>, vector<1x128xf32>
      %203 = tpu.concatenate %202, %201 in 0 : vector<1x128xf32>, vector<16x128xf32> -> vector<17x128xf32>
      %c0_90 = arith.constant 0 : index
      %c0_91 = arith.constant 0 : index
      %204 = vector.load %arg6[%c0_90, %c0_91] : memref<17x128xf32, #tpu.memory_space<vmem>>, vector<17x128xf32>
      %205 = arith.addf %203, %204 : vector<17x128xf32>
      %c0_92 = arith.constant 0 : index
      %c0_93 = arith.constant 0 : index
      %206 = vector.load %arg22[%c0_92, %c0_93] : memref<17x128xf32, #tpu.memory_space<vmem>>, vector<17x128xf32>
      tpu.vector_store %arg22[%c0_92, %c0_93], %205 {strides = array<i32>} : memref<17x128xf32, #tpu.memory_space<vmem>>, vector<17x128xf32>,
    } else {
    }
    %c0 = arith.constant 0 : index
    %c0_1 = arith.constant 0 : index
    %3 = vector.load %arg22[%c0, %c0_1] : memref<17x128xf32, #tpu.memory_space<vmem>>, vector<17x128xf32>
    %c0_2 = arith.constant 0 : index
    %c0_3 = arith.constant 0 : index
    %c0_4 = arith.constant 0 : index
    %4 = vector.load %arg7[%c0_2, %c0_3, %c0_4] : memref<1x1x128xf32, #tpu.memory_space<vmem>>, vector<1x1x128xf32>
    %5 = vector.shape_cast %4 : vector<1x1x128xf32> to vector<1x128xf32>
    %c0_5 = arith.constant 0 : index
    %c0_6 = arith.constant 0 : index
    %c0_7 = arith.constant 0 : index
    %6 = vector.load %arg8[%c0_5, %c0_6, %c0_7] : memref<1x1x128xf32, #tpu.memory_space<vmem>>, vector<1x1x128xf32>
    %7 = vector.shape_cast %6 : vector<1x1x128xf32> to vector<1x128xf32>
    %cst = arith.constant dense<0.000000e+00> : vector<17xf32>
    %8 = vector.multi_reduction <add>, %3, %cst [1] : vector<17x128xf32> to vector<17xf32>
    %9 = vector.shape_cast %8 : vector<17xf32> to vector<17x1xf32>
    %cst_8 = arith.constant 1.280000e+02 : f32
    %10 = vector.broadcast %cst_8 : f32 to vector<17x1xf32>
    %11 = arith.divf %9, %10 : vector<17x1xf32>
    %12 = arith.mulf %3, %3 : vector<17x128xf32>
    %cst_9 = arith.constant dense<0.000000e+00> : vector<17xf32>
    %13 = vector.multi_reduction <add>, %12, %cst_9 [1] : vector<17x128xf32> to vector<17xf32>
    %14 = vector.shape_cast %13 : vector<17xf32> to vector<17x1xf32>
    %cst_10 = arith.constant 1.280000e+02 : f32
    %15 = vector.broadcast %cst_10 : f32 to vector<17x1xf32>
    %16 = arith.divf %14, %15 : vector<17x1xf32>
    %17 = arith.mulf %11, %11 : vector<17x1xf32>
    %18 = arith.subf %16, %17 : vector<17x1xf32>
    %19 = vector.broadcast %11 : vector<17x1xf32> to vector<17x128xf32>
    %20 = arith.subf %3, %19 : vector<17x128xf32>
    %cst_11 = arith.constant 9.99999997E-7 : f32
    %21 = vector.broadcast %cst_11 : f32 to vector<17x1xf32>
    %22 = arith.addf %18, %21 : vector<17x1xf32>
    %23 = math.rsqrt %22 : vector<17x1xf32>
    %24 = vector.broadcast %23 : vector<17x1xf32> to vector<17x128xf32>
    %25 = arith.mulf %20, %24 : vector<17x128xf32>
    %26 = vector.broadcast %5 : vector<1x128xf32> to vector<17x128xf32>
    %27 = arith.mulf %25, %26 : vector<17x128xf32>
    %28 = vector.broadcast %7 : vector<1x128xf32> to vector<17x128xf32>
    %29 = arith.addf %27, %28 : vector<17x128xf32>
    %30 = arith.truncf %29 : vector<17x128xf32> to vector<17x128xbf16>
    %c0_12 = arith.constant 0 : index
    %c0_13 = arith.constant 0 : index
    %c0_14 = arith.constant 0 : index
    %31 = vector.load %arg9[%c0_12, %c0_13, %c0_14] : memref<1x128x384xbf16, #tpu.memory_space<vmem>>, vector<1x128x384xbf16>
    %32 = vector.shape_cast %31 : vector<1x128x384xbf16> to vector<128x384xbf16>
    %cst_15 = arith.constant dense<0.000000e+00> : vector<17x384xf32>
    %33 = tpu.matmul %30, %32, %cst_15 {dimension_numbers = #tpu.dot_dimension_numbers<[1], [0], [0], [1], [0, 0, 1, 1], [], []>} : vector<17x128xbf16>, vector<128x384xbf16>, vector<17x384xf32> -> vector<17x384xf32>
    %c0_16 = arith.constant 0 : index
    %c0_17 = arith.constant 0 : index
    %c0_18 = arith.constant 0 : index
    %34 = vector.load %arg10[%c0_16, %c0_17, %c0_18] : memref<1x1x384xf32, #tpu.memory_space<vmem>>, vector<1x1x384xf32>
    %35 = vector.shape_cast %34 : vector<1x1x384xf32> to vector<1x384xf32>
    %36 = vector.broadcast %35 : vector<1x384xf32> to vector<17x384xf32>
    %37 = arith.addf %33, %36 : vector<17x384xf32>
    %38 = vector.extract_strided_slice %37 {offsets = [0, 0], sizes = [17, 128], strides = [1, 1]} : vector<17x384xf32> to vector<17x128xf32>
    %39 = vector.extract_strided_slice %37 {offsets = [0, 128], sizes = [17, 128], strides = [1, 1]} : vector<17x384xf32> to vector<17x128xf32>
    %40 = vector.extract_strided_slice %37 {offsets = [0, 256], sizes = [17, 128], strides = [1, 1]} : vector<17x384xf32> to vector<17x128xf32>
    %41 = vector.extract_strided_slice %38 {offsets = [0, 0], sizes = [17, 32], strides = [1, 1]} : vector<17x128xf32> to vector<17x32xf32>
    %42 = arith.truncf %41 : vector<17x32xf32> to vector<17x32xbf16>
    %43 = vector.extract_strided_slice %39 {offsets = [0, 0], sizes = [17, 32], strides = [1, 1]} : vector<17x128xf32> to vector<17x32xf32>
    %44 = arith.truncf %43 : vector<17x32xf32> to vector<17x32xbf16>
    %45 = vector.extract_strided_slice %40 {offsets = [0, 0], sizes = [17, 32], strides = [1, 1]} : vector<17x128xf32> to vector<17x32xf32>
    %46 = arith.truncf %45 : vector<17x32xf32> to vector<17x32xbf16>
    %cst_19 = arith.constant dense<0.000000e+00> : vector<17x17xf32>
    %47 = tpu.matmul %42, %44, %cst_19 {dimension_numbers = #tpu.dot_dimension_numbers<[1], [1], [0], [0], [0, 0, 1, 0], [], []>} : vector<17x32xbf16>, vector<17x32xbf16>, vector<17x17xf32> -> vector<17x17xf32>
    %cst_20 = arith.constant dense<0xFF800000> : vector<17xf32>
    %48 = vector.multi_reduction <maximumf>, %47, %cst_20 [1] : vector<17x17xf32> to vector<17xf32>
    %49 = vector.shape_cast %48 : vector<17xf32> to vector<17x1xf32>
    %50 = vector.broadcast %49 : vector<17x1xf32> to vector<17x17xf32>
    %51 = arith.subf %47, %50 : vector<17x17xf32>
    %52 = math.exp %51 : vector<17x17xf32>
    %cst_21 = arith.constant dense<0.000000e+00> : vector<17xf32>
    %53 = vector.multi_reduction <add>, %52, %cst_21 [1] : vector<17x17xf32> to vector<17xf32>
    %54 = vector.shape_cast %53 : vector<17xf32> to vector<17x1xf32>
    %55 = arith.truncf %52 : vector<17x17xf32> to vector<17x17xbf16>
    %cst_22 = arith.constant dense<0.000000e+00> : vector<17x32xf32>
    %56 = tpu.matmul %55, %46, %cst_22 {dimension_numbers = #tpu.dot_dimension_numbers<[1], [0], [0], [1], [0, 0, 1, 1], [], []>} : vector<17x17xbf16>, vector<17x32xbf16>, vector<17x32xf32> -> vector<17x32xf32>
    %57 = tpu.reciprocal %54 {approx = true} : vector<17x1xf32> -> vector<17x1xf32>
    %58 = vector.broadcast %57 : vector<17x1xf32> to vector<17x32xf32>
    %59 = arith.mulf %56, %58 : vector<17x32xf32>
    %60 = vector.extract_strided_slice %38 {offsets = [0, 32], sizes = [17, 32], strides = [1, 1]} : vector<17x128xf32> to vector<17x32xf32>
    %61 = arith.truncf %60 : vector<17x32xf32> to vector<17x32xbf16>
    %62 = vector.extract_strided_slice %39 {offsets = [0, 32], sizes = [17, 32], strides = [1, 1]} : vector<17x128xf32> to vector<17x32xf32>
    %63 = arith.truncf %62 : vector<17x32xf32> to vector<17x32xbf16>
    %64 = vector.extract_strided_slice %40 {offsets = [0, 32], sizes = [17, 32], strides = [1, 1]} : vector<17x128xf32> to vector<17x32xf32>
    %65 = arith.truncf %64 : vector<17x32xf32> to vector<17x32xbf16>
    %cst_23 = arith.constant dense<0.000000e+00> : vector<17x17xf32>
    %66 = tpu.matmul %61, %63, %cst_23 {dimension_numbers = #tpu.dot_dimension_numbers<[1], [1], [0], [0], [0, 0, 1, 0], [], []>} : vector<17x32xbf16>, vector<17x32xbf16>, vector<17x17xf32> -> vector<17x17xf32>
    %cst_24 = arith.constant dense<0xFF800000> : vector<17xf32>
    %67 = vector.multi_reduction <maximumf>, %66, %cst_24 [1] : vector<17x17xf32> to vector<17xf32>
    %68 = vector.shape_cast %67 : vector<17xf32> to vector<17x1xf32>
    %69 = vector.broadcast %68 : vector<17x1xf32> to vector<17x17xf32>
    %70 = arith.subf %66, %69 : vector<17x17xf32>
    %71 = math.exp %70 : vector<17x17xf32>
    %cst_25 = arith.constant dense<0.000000e+00> : vector<17xf32>
    %72 = vector.multi_reduction <add>, %71, %cst_25 [1] : vector<17x17xf32> to vector<17xf32>
    %73 = vector.shape_cast %72 : vector<17xf32> to vector<17x1xf32>
    %74 = arith.truncf %71 : vector<17x17xf32> to vector<17x17xbf16>
    %cst_26 = arith.constant dense<0.000000e+00> : vector<17x32xf32>
    %75 = tpu.matmul %74, %65, %cst_26 {dimension_numbers = #tpu.dot_dimension_numbers<[1], [0], [0], [1], [0, 0, 1, 1], [], []>} : vector<17x17xbf16>, vector<17x32xbf16>, vector<17x32xf32> -> vector<17x32xf32>
    %76 = tpu.reciprocal %73 {approx = true} : vector<17x1xf32> -> vector<17x1xf32>
    %77 = vector.broadcast %76 : vector<17x1xf32> to vector<17x32xf32>
    %78 = arith.mulf %75, %77 : vector<17x32xf32>
    %79 = vector.extract_strided_slice %38 {offsets = [0, 64], sizes = [17, 32], strides = [1, 1]} : vector<17x128xf32> to vector<17x32xf32>
    %80 = arith.truncf %79 : vector<17x32xf32> to vector<17x32xbf16>
    %81 = vector.extract_strided_slice %39 {offsets = [0, 64], sizes = [17, 32], strides = [1, 1]} : vector<17x128xf32> to vector<17x32xf32>
    %82 = arith.truncf %81 : vector<17x32xf32> to vector<17x32xbf16>
    %83 = vector.extract_strided_slice %40 {offsets = [0, 64], sizes = [17, 32], strides = [1, 1]} : vector<17x128xf32> to vector<17x32xf32>
    %84 = arith.truncf %83 : vector<17x32xf32> to vector<17x32xbf16>
    %cst_27 = arith.constant dense<0.000000e+00> : vector<17x17xf32>
    %85 = tpu.matmul %80, %82, %cst_27 {dimension_numbers = #tpu.dot_dimension_numbers<[1], [1], [0], [0], [0, 0, 1, 0], [], []>} : vector<17x32xbf16>, vector<17x32xbf16>, vector<17x17xf32> -> vector<17x17xf32>
    %cst_28 = arith.constant dense<0xFF800000> : vector<17xf32>
    %86 = vector.multi_reduction <maximumf>, %85, %cst_28 [1] : vector<17x17xf32> to vector<17xf32>
    %87 = vector.shape_cast %86 : vector<17xf32> to vector<17x1xf32>
    %88 = vector.broadcast %87 : vector<17x1xf32> to vector<17x17xf32>
    %89 = arith.subf %85, %88 : vector<17x17xf32>
    %90 = math.exp %89 : vector<17x17xf32>
    %cst_29 = arith.constant dense<0.000000e+00> : vector<17xf32>
    %91 = vector.multi_reduction <add>, %90, %cst_29 [1] : vector<17x17xf32> to vector<17xf32>
    %92 = vector.shape_cast %91 : vector<17xf32> to vector<17x1xf32>
    %93 = arith.truncf %90 : vector<17x17xf32> to vector<17x17xbf16>
    %cst_30 = arith.constant dense<0.000000e+00> : vector<17x32xf32>
    %94 = tpu.matmul %93, %84, %cst_30 {dimension_numbers = #tpu.dot_dimension_numbers<[1], [0], [0], [1], [0, 0, 1, 1], [], []>} : vector<17x17xbf16>, vector<17x32xbf16>, vector<17x32xf32> -> vector<17x32xf32>
    %95 = tpu.reciprocal %92 {approx = true} : vector<17x1xf32> -> vector<17x1xf32>
    %96 = vector.broadcast %95 : vector<17x1xf32> to vector<17x32xf32>
    %97 = arith.mulf %94, %96 : vector<17x32xf32>
    %98 = vector.extract_strided_slice %38 {offsets = [0, 96], sizes = [17, 32], strides = [1, 1]} : vector<17x128xf32> to vector<17x32xf32>
    %99 = arith.truncf %98 : vector<17x32xf32> to vector<17x32xbf16>
    %100 = vector.extract_strided_slice %39 {offsets = [0, 96], sizes = [17, 32], strides = [1, 1]} : vector<17x128xf32> to vector<17x32xf32>
    %101 = arith.truncf %100 : vector<17x32xf32> to vector<17x32xbf16>
    %102 = vector.extract_strided_slice %40 {offsets = [0, 96], sizes = [17, 32], strides = [1, 1]} : vector<17x128xf32> to vector<17x32xf32>
    %103 = arith.truncf %102 : vector<17x32xf32> to vector<17x32xbf16>
    %cst_31 = arith.constant dense<0.000000e+00> : vector<17x17xf32>
    %104 = tpu.matmul %99, %101, %cst_31 {dimension_numbers = #tpu.dot_dimension_numbers<[1], [1], [0], [0], [0, 0, 1, 0], [], []>} : vector<17x32xbf16>, vector<17x32xbf16>, vector<17x17xf32> -> vector<17x17xf32>
    %cst_32 = arith.constant dense<0xFF800000> : vector<17xf32>
    %105 = vector.multi_reduction <maximumf>, %104, %cst_32 [1] : vector<17x17xf32> to vector<17xf32>
    %106 = vector.shape_cast %105 : vector<17xf32> to vector<17x1xf32>
    %107 = vector.broadcast %106 : vector<17x1xf32> to vector<17x17xf32>
    %108 = arith.subf %104, %107 : vector<17x17xf32>
    %109 = math.exp %108 : vector<17x17xf32>
    %cst_33 = arith.constant dense<0.000000e+00> : vector<17xf32>
    %110 = vector.multi_reduction <add>, %109, %cst_33 [1] : vector<17x17xf32> to vector<17xf32>
    %111 = vector.shape_cast %110 : vector<17xf32> to vector<17x1xf32>
    %112 = arith.truncf %109 : vector<17x17xf32> to vector<17x17xbf16>
    %cst_34 = arith.constant dense<0.000000e+00> : vector<17x32xf32>
    %113 = tpu.matmul %112, %103, %cst_34 {dimension_numbers = #tpu.dot_dimension_numbers<[1], [0], [0], [1], [0, 0, 1, 1], [], []>} : vector<17x17xbf16>, vector<17x32xbf16>, vector<17x32xf32> -> vector<17x32xf32>
    %114 = tpu.reciprocal %111 {approx = true} : vector<17x1xf32> -> vector<17x1xf32>
    %115 = vector.broadcast %114 : vector<17x1xf32> to vector<17x32xf32>
    %116 = arith.mulf %113, %115 : vector<17x32xf32>
    %117 = tpu.concatenate %59, %78, %97, %116 in 1 : vector<17x32xf32>, vector<17x32xf32>, vector<17x32xf32>, vector<17x32xf32> -> vector<17x128xf32>
    %118 = arith.truncf %117 : vector<17x128xf32> to vector<17x128xbf16>
    %c0_35 = arith.constant 0 : index
    %c0_36 = arith.constant 0 : index
    %c0_37 = arith.constant 0 : index
    %119 = vector.load %arg11[%c0_35, %c0_36, %c0_37] : memref<1x128x128xbf16, #tpu.memory_space<vmem>>, vector<1x128x128xbf16>
    %120 = vector.shape_cast %119 : vector<1x128x128xbf16> to vector<128x128xbf16>
    %cst_38 = arith.constant dense<0.000000e+00> : vector<17x128xf32>
    %121 = tpu.matmul %118, %120, %cst_38 {dimension_numbers = #tpu.dot_dimension_numbers<[1], [0], [0], [1], [0, 0, 1, 1], [], []>} : vector<17x128xbf16>, vector<128x128xbf16>, vector<17x128xf32> -> vector<17x128xf32>
    %c0_39 = arith.constant 0 : index
    %c0_40 = arith.constant 0 : index
    %c0_41 = arith.constant 0 : index
    %122 = vector.load %arg12[%c0_39, %c0_40, %c0_41] : memref<1x1x128xf32, #tpu.memory_space<vmem>>, vector<1x1x128xf32>
    %123 = vector.shape_cast %122 : vector<1x1x128xf32> to vector<1x128xf32>
    %124 = vector.broadcast %123 : vector<1x128xf32> to vector<17x128xf32>
    %125 = arith.addf %121, %124 : vector<17x128xf32>
    %c0_42 = arith.constant 0 : index
    %c0_43 = arith.constant 0 : index
    %c0_44 = arith.constant 0 : index
    %126 = vector.load %arg13[%c0_42, %c0_43, %c0_44] : memref<1x1x128xf32, #tpu.memory_space<vmem>>, vector<1x1x128xf32>
    %127 = vector.shape_cast %126 : vector<1x1x128xf32> to vector<1x128xf32>
    %128 = vector.broadcast %127 : vector<1x128xf32> to vector<17x128xf32>
    %129 = arith.mulf %125, %128 : vector<17x128xf32>
    %130 = arith.addf %3, %129 : vector<17x128xf32>
    %c0_45 = arith.constant 0 : index
    %c0_46 = arith.constant 0 : index
    %c0_47 = arith.constant 0 : index
    %131 = vector.load %arg14[%c0_45, %c0_46, %c0_47] : memref<1x1x128xf32, #tpu.memory_space<vmem>>, vector<1x1x128xf32>
    %132 = vector.shape_cast %131 : vector<1x1x128xf32> to vector<1x128xf32>
    %c0_48 = arith.constant 0 : index
    %c0_49 = arith.constant 0 : index
    %c0_50 = arith.constant 0 : index
    %133 = vector.load %arg15[%c0_48, %c0_49, %c0_50] : memref<1x1x128xf32, #tpu.memory_space<vmem>>, vector<1x1x128xf32>
    %134 = vector.shape_cast %133 : vector<1x1x128xf32> to vector<1x128xf32>
    %cst_51 = arith.constant dense<0.000000e+00> : vector<17xf32>
    %135 = vector.multi_reduction <add>, %130, %cst_51 [1] : vector<17x128xf32> to vector<17xf32>
    %136 = vector.shape_cast %135 : vector<17xf32> to vector<17x1xf32>
    %cst_52 = arith.constant 1.280000e+02 : f32
    %137 = vector.broadcast %cst_52 : f32 to vector<17x1xf32>
    %138 = arith.divf %136, %137 : vector<17x1xf32>
    %139 = arith.mulf %130, %130 : vector<17x128xf32>
    %cst_53 = arith.constant dense<0.000000e+00> : vector<17xf32>
    %140 = vector.multi_reduction <add>, %139, %cst_53 [1] : vector<17x128xf32> to vector<17xf32>
    %141 = vector.shape_cast %140 : vector<17xf32> to vector<17x1xf32>
    %cst_54 = arith.constant 1.280000e+02 : f32
    %142 = vector.broadcast %cst_54 : f32 to vector<17x1xf32>
    %143 = arith.divf %141, %142 : vector<17x1xf32>
    %144 = arith.mulf %138, %138 : vector<17x1xf32>
    %145 = arith.subf %143, %144 : vector<17x1xf32>
    %146 = vector.broadcast %138 : vector<17x1xf32> to vector<17x128xf32>
    %147 = arith.subf %130, %146 : vector<17x128xf32>
    %cst_55 = arith.constant 9.99999997E-7 : f32
    %148 = vector.broadcast %cst_55 : f32 to vector<17x1xf32>
    %149 = arith.addf %145, %148 : vector<17x1xf32>
    %150 = math.rsqrt %149 : vector<17x1xf32>
    %151 = vector.broadcast %150 : vector<17x1xf32> to vector<17x128xf32>
    %152 = arith.mulf %147, %151 : vector<17x128xf32>
    %153 = vector.broadcast %132 : vector<1x128xf32> to vector<17x128xf32>
    %154 = arith.mulf %152, %153 : vector<17x128xf32>
    %155 = vector.broadcast %134 : vector<1x128xf32> to vector<17x128xf32>
    %156 = arith.addf %154, %155 : vector<17x128xf32>
    %157 = arith.truncf %156 : vector<17x128xf32> to vector<17x128xbf16>
    %c0_56 = arith.constant 0 : index
    %c0_57 = arith.constant 0 : index
    %c0_58 = arith.constant 0 : index
    %158 = vector.load %arg16[%c0_56, %c0_57, %c0_58] : memref<1x128x512xbf16, #tpu.memory_space<vmem>>, vector<1x128x512xbf16>
    %159 = vector.shape_cast %158 : vector<1x128x512xbf16> to vector<128x512xbf16>
    %cst_59 = arith.constant dense<0.000000e+00> : vector<17x512xf32>
    %160 = tpu.matmul %157, %159, %cst_59 {dimension_numbers = #tpu.dot_dimension_numbers<[1], [0], [0], [1], [0, 0, 1, 1], [], []>} : vector<17x128xbf16>, vector<128x512xbf16>, vector<17x512xf32> -> vector<17x512xf32>
    %c0_60 = arith.constant 0 : index
    %c0_61 = arith.constant 0 : index
    %c0_62 = arith.constant 0 : index
    %161 = vector.load %arg17[%c0_60, %c0_61, %c0_62] : memref<1x1x512xf32, #tpu.memory_space<vmem>>, vector<1x1x512xf32>
    %162 = vector.shape_cast %161 : vector<1x1x512xf32> to vector<1x512xf32>
    %163 = vector.broadcast %162 : vector<1x512xf32> to vector<17x512xf32>
    %164 = arith.addf %160, %163 : vector<17x512xf32>
    %165 = arith.mulf %164, %164 : vector<17x512xf32>
    %166 = arith.mulf %164, %165 : vector<17x512xf32>
    %cst_63 = arith.constant 4.471500e-02 : f32
    %167 = vector.broadcast %cst_63 : f32 to vector<17x512xf32>
    %168 = arith.mulf %167, %166 : vector<17x512xf32>
    %169 = arith.addf %164, %168 : vector<17x512xf32>
    %cst_64 = arith.constant 0.797884583 : f32
    %170 = vector.broadcast %cst_64 : f32 to vector<17x512xf32>
    %171 = arith.mulf %170, %169 : vector<17x512xf32>
    %172 = math.tanh %171 : vector<17x512xf32>
    %cst_65 = arith.constant 1.000000e+00 : f32
    %173 = vector.broadcast %cst_65 : f32 to vector<17x512xf32>
    %174 = arith.addf %173, %172 : vector<17x512xf32>
    %cst_66 = arith.constant 5.000000e-01 : f32
    %175 = vector.broadcast %cst_66 : f32 to vector<17x512xf32>
    %176 = arith.mulf %175, %174 : vector<17x512xf32>
    %177 = arith.mulf %164, %176 : vector<17x512xf32>
    %178 = arith.truncf %177 : vector<17x512xf32> to vector<17x512xbf16>
    %c0_67 = arith.constant 0 : index
    %c0_68 = arith.constant 0 : index
    %c0_69 = arith.constant 0 : index
    %179 = vector.load %arg18[%c0_67, %c0_68, %c0_69] : memref<1x512x128xbf16, #tpu.memory_space<vmem>>, vector<1x512x128xbf16>
    %180 = vector.shape_cast %179 : vector<1x512x128xbf16> to vector<512x128xbf16>
    %cst_70 = arith.constant dense<0.000000e+00> : vector<17x128xf32>
    %181 = tpu.matmul %178, %180, %cst_70 {dimension_numbers = #tpu.dot_dimension_numbers<[1], [0], [0], [1], [0, 0, 1, 1], [], []>} : vector<17x512xbf16>, vector<512x128xbf16>, vector<17x128xf32> -> vector<17x128xf32>
    %c0_71 = arith.constant 0 : index
    %c0_72 = arith.constant 0 : index
    %c0_73 = arith.constant 0 : index
    %182 = vector.load %arg19[%c0_71, %c0_72, %c0_73] : memref<1x1x128xf32, #tpu.memory_space<vmem>>, vector<1x1x128xf32>
    %183 = vector.shape_cast %182 : vector<1x1x128xf32> to vector<1x128xf32>
    %184 = vector.broadcast %183 : vector<1x128xf32> to vector<17x128xf32>
    %185 = arith.addf %181, %184 : vector<17x128xf32>
    %c0_74 = arith.constant 0 : index
    %c0_75 = arith.constant 0 : index
    %c0_76 = arith.constant 0 : index
    %186 = vector.load %arg20[%c0_74, %c0_75, %c0_76] : memref<1x1x128xf32, #tpu.memory_space<vmem>>, vector<1x1x128xf32>
    %187 = vector.shape_cast %186 : vector<1x1x128xf32> to vector<1x128xf32>
    %188 = vector.broadcast %187 : vector<1x128xf32> to vector<17x128xf32>
    %189 = arith.mulf %185, %188 : vector<17x128xf32>
    %190 = arith.addf %130, %189 : vector<17x128xf32>
    %c0_77 = arith.constant 0 : index
    %c0_78 = arith.constant 0 : index
    %191 = vector.load %arg22[%c0_77, %c0_78] : memref<17x128xf32, #tpu.memory_space<vmem>>, vector<17x128xf32>
    tpu.vector_store %arg22[%c0_77, %c0_78], %190 {strides = array<i32>} : memref<17x128xf32, #tpu.memory_space<vmem>>, vector<17x128xf32>,
    %c1_i32 = arith.constant 1 : i32
    %192 = arith.cmpi eq, %arg1, %c1_i32 : i32
    %193 = arith.extui %192 : i1 to i32
    %c0_i32_79 = arith.constant 0 : i32
    %194 = arith.cmpi ne, %193, %c0_i32_79 : i32
    scf.if %194 {
      %c0_80 = arith.constant 0 : index
      %c0_81 = arith.constant 0 : index
      %c0_82 = arith.constant 0 : index
      %195 = vector.load %arg21[%c0_80, %c0_81, %c0_82] : memref<1x17x128xf32, #tpu.memory_space<vmem>>, vector<1x17x128xf32>
      %196 = vector.shape_cast %195 : vector<1x17x128xf32> to vector<17x128xf32>
      %197 = vector.shape_cast %190 : vector<17x128xf32> to vector<1x17x128xf32>
      tpu.vector_store %arg21[%c0_80, %c0_81, %c0_82], %197 {strides = array<i32>} : memref<1x17x128xf32, #tpu.memory_space<vmem>>, vector<1x17x128xf32>,
    } else {
    }
    return
  }
  func.func @transform_0(%arg0: i32, %arg1: i32) -> (i32, i32, i32) {
    %c0_i32 = arith.constant 0 : i32
    %c0_i32_0 = arith.constant 0 : i32
    %c0_i32_1 = arith.constant 0 : i32
    return %arg0, %c0_i32, %c0_i32_0 : i32, i32, i32
  }
  func.func @transform_1(%arg0: i32, %arg1: i32) -> (i32, i32) {
    %c0_i32 = arith.constant 0 : i32
    %c0_i32_0 = arith.constant 0 : i32
    %c0_i32_1 = arith.constant 0 : i32
    return %c0_i32, %c0_i32_0 : i32, i32
  }
  func.func @transform_2(%arg0: i32, %arg1: i32) -> (i32, i32) {
    %c0_i32 = arith.constant 0 : i32
    %c0_i32_0 = arith.constant 0 : i32
    %c0_i32_1 = arith.constant 0 : i32
    return %c0_i32, %c0_i32_0 : i32, i32
  }
  func.func @transform_3(%arg0: i32, %arg1: i32) -> (i32, i32) {
    %c0_i32 = arith.constant 0 : i32
    %c0_i32_0 = arith.constant 0 : i32
    %c0_i32_1 = arith.constant 0 : i32
    return %c0_i32, %c0_i32_0 : i32, i32
  }
  func.func @transform_4(%arg0: i32, %arg1: i32) -> (i32, i32) {
    %c0_i32 = arith.constant 0 : i32
    %c0_i32_0 = arith.constant 0 : i32
    %c0_i32_1 = arith.constant 0 : i32
    return %c0_i32, %c0_i32_0 : i32, i32
  }
  func.func @transform_5(%arg0: i32, %arg1: i32) -> (i32, i32, i32) {
    %c0_i32 = arith.constant 0 : i32
    %c0_i32_0 = arith.constant 0 : i32
    %c0_i32_1 = arith.constant 0 : i32
    return %arg1, %c0_i32, %c0_i32_0 : i32, i32, i32
  }
  func.func @transform_6(%arg0: i32, %arg1: i32) -> (i32, i32, i32) {
    %c0_i32 = arith.constant 0 : i32
    %c0_i32_0 = arith.constant 0 : i32
    %c0_i32_1 = arith.constant 0 : i32
    return %arg1, %c0_i32, %c0_i32_0 : i32, i32, i32
  }
  func.func @transform_7(%arg0: i32, %arg1: i32) -> (i32, i32, i32) {
    %c0_i32 = arith.constant 0 : i32
    %c0_i32_0 = arith.constant 0 : i32
    %c0_i32_1 = arith.constant 0 : i32
    return %arg1, %c0_i32, %c0_i32_0 : i32, i32, i32
  }
  func.func @transform_8(%arg0: i32, %arg1: i32) -> (i32, i32, i32) {
    %c0_i32 = arith.constant 0 : i32
    %c0_i32_0 = arith.constant 0 : i32
    %c0_i32_1 = arith.constant 0 : i32
    return %arg1, %c0_i32, %c0_i32_0 : i32, i32, i32
  }
  func.func @transform_9(%arg0: i32, %arg1: i32) -> (i32, i32, i32) {
    %c0_i32 = arith.constant 0 : i32
    %c0_i32_0 = arith.constant 0 : i32
    %c0_i32_1 = arith.constant 0 : i32
    return %arg1, %c0_i32, %c0_i32_0 : i32, i32, i32
  }
  func.func @transform_10(%arg0: i32, %arg1: i32) -> (i32, i32, i32) {
    %c0_i32 = arith.constant 0 : i32
    %c0_i32_0 = arith.constant 0 : i32
    %c0_i32_1 = arith.constant 0 : i32
    return %arg1, %c0_i32, %c0_i32_0 : i32, i32, i32
  }
  func.func @transform_11(%arg0: i32, %arg1: i32) -> (i32, i32, i32) {
    %c0_i32 = arith.constant 0 : i32
    %c0_i32_0 = arith.constant 0 : i32
    %c0_i32_1 = arith.constant 0 : i32
    return %arg1, %c0_i32, %c0_i32_0 : i32, i32, i32
  }
  func.func @transform_12(%arg0: i32, %arg1: i32) -> (i32, i32, i32) {
    %c0_i32 = arith.constant 0 : i32
    %c0_i32_0 = arith.constant 0 : i32
    %c0_i32_1 = arith.constant 0 : i32
    return %arg1, %c0_i32, %c0_i32_0 : i32, i32, i32
  }
  func.func @transform_13(%arg0: i32, %arg1: i32) -> (i32, i32, i32) {
    %c0_i32 = arith.constant 0 : i32
    %c0_i32_0 = arith.constant 0 : i32
    %c0_i32_1 = arith.constant 0 : i32
    return %arg1, %c0_i32, %c0_i32_0 : i32, i32, i32
  }
  func.func @transform_14(%arg0: i32, %arg1: i32) -> (i32, i32, i32) {
    %c0_i32 = arith.constant 0 : i32
    %c0_i32_0 = arith.constant 0 : i32
    %c0_i32_1 = arith.constant 0 : i32
    return %arg1, %c0_i32, %c0_i32_0 : i32, i32, i32
  }
  func.func @transform_15(%arg0: i32, %arg1: i32) -> (i32, i32, i32) {
    %c0_i32 = arith.constant 0 : i32
    %c0_i32_0 = arith.constant 0 : i32
    %c0_i32_1 = arith.constant 0 : i32
    return %arg1, %c0_i32, %c0_i32_0 : i32, i32, i32
  }
  func.func @transform_16(%arg0: i32, %arg1: i32) -> (i32, i32, i32) {
    %c0_i32 = arith.constant 0 : i32
    %c0_i32_0 = arith.constant 0 : i32
    %c0_i32_1 = arith.constant 0 : i32
    return %arg1, %c0_i32, %c0_i32_0 : i32, i32, i32
  }
  func.func @transform_17(%arg0: i32, %arg1: i32) -> (i32, i32, i32) {
    %c0_i32 = arith.constant 0 : i32
    %c0_i32_0 = arith.constant 0 : i32
    %c0_i32_1 = arith.constant 0 : i32
    return %arg1, %c0_i32, %c0_i32_0 : i32, i32, i32
  }
  func.func @transform_18(%arg0: i32, %arg1: i32) -> (i32, i32, i32) {
    %c0_i32 = arith.constant 0 : i32
    %c0_i32_0 = arith.constant 0 : i32
    %c0_i32_1 = arith.constant 0 : i32
    return %arg1, %c0_i32, %c0_i32_0 : i32, i32, i32
  }
  func.func @transform_19(%arg0: i32, %arg1: i32) -> (i32, i32, i32) {
    %c0_i32 = arith.constant 0 : i32
    %c0_i32_0 = arith.constant 0 : i32
    %c0_i32_1 = arith.constant 0 : i32
    return %arg0, %c0_i32, %c0_i32_0 : i32, i32, i32
  }
}

</mosaic_0001>

<bundles_post_ra>
// kernel: tpu_custom_call.1
= control target key start
LH: loop header
LB: loop body
LE: loop exit
PB: predicated region body
PF: predicated region fallthrough
CT: control target
= control target key end

     0   :  { %s5864_s0 = inlined_call_operand.hbm [shape: bf16[2,16,192], index: 0, kind: input, shape index: {}]   ;;  %s5865_s1 = inlined_call_operand.hbm [shape: bf16[192,128], index: 1, kind: input, shape index: {}]   ;;  %s5866_s2 = inlined_call_operand.hbm [shape: f32[1,128], index: 2, kind: input, shape index: {}]   ;;  %s5867_s3 = inlined_call_operand.hbm [shape: f32[1,128], index: 3, kind: input, shape index: {}]   ;;  %s5868_s4 = inlined_call_operand.hbm [shape: f32[17,128], index: 4, kind: input, shape index: {}]   ;;  %s5869_s5 = inlined_call_operand.vmem [shape: f32[2,1,128], index: 5, kind: input, shape index: {}]   ;;  %s5870_s6 = inlined_call_operand.hbm [shape: f32[2,1,128], index: 6, kind: input, shape index: {}]   ;;  %s5871_s7 = inlined_call_operand.hbm [shape: bf16[2,128,384], index: 7, kind: input, shape index: {}]   ;;  %s5872_s8 = inlined_call_operand.vmem [shape: f32[2,1,384], index: 8, kind: input, shape index: {}]   ;;  %s5873_s9 = inlined_call_operand.hbm [shape: bf16[2,128,128], index: 9, kind: input, shape index: {}]   ;;  %s5874_s10 = inlined_call_operand.vmem [shape: f32[2,1,128], index: 10, kind: input, shape index: {}]   ;;  %s5875_s11 = inlined_call_operand.vmem [shape: f32[2,1,128], index: 11, kind: input, shape index: {}]   ;;  %s5876_s12 = inlined_call_operand.hbm [shape: f32[2,1,128], index: 12, kind: input, shape index: {}]   ;;  %s5877_s13 = inlined_call_operand.vmem [shape: f32[2,1,128], index: 13, kind: input, shape index: {}]   ;;  %s5878_s14 = inlined_call_operand.hbm [shape: bf16[2,128,512], index: 14, kind: input, shape index: {}]   ;;  %s5879_s15 = inlined_call_operand.vmem [shape: f32[2,1,512], index: 15, kind: input, shape index: {}]   ;;  %s5880_s16 = inlined_call_operand.hbm [shape: bf16[2,512,128], index: 16, kind: input, shape index: {}]   ;;  %s5881_s17 = inlined_call_operand.vmem [shape: f32[2,1,128], index: 17, kind: input, shape index: {}]   ;;  %s5882_s18 = inlined_call_operand.vmem [shape: f32[2,1,128], index: 18, kind: input, shape index: {}]   ;;  %s5883_s19 = inlined_call_operand.vmem [shape: f32[2,17,128], index: 19, kind: output, shape index: {}]  }
   0x1   :  { %5919 = sst [smem:[#allocation42_spill]] %s5864_s0 }
   0x2   :  { %5920 = sst [smem:[#allocation43_spill]] %s5865_s1 }
   0x3   :  { %5921 = sst [smem:[#allocation44_spill]] %s5866_s2 }
   0x4   :  { %5922 = sst [smem:[#allocation45_spill]] %s5867_s3 }
   0x5   :  { %5923 = sst [smem:[#allocation46_spill]] %s5868_s4 }
   0x6   :  { %5924 = sst [smem:[#allocation47_spill]] %s5869_s5 }
   0x7   :  { %5925 = sst [smem:[#allocation48_spill]] %s5870_s6 }
   0x8   :  { %5926 = sst [smem:[#allocation49_spill]] %s5871_s7 }
   0x9   :  { %5927 = sst [smem:[#allocation50_spill]] %s5872_s8 }
   0xa   :  { %5928 = sst [smem:[#allocation51_spill]] %s5873_s9 }
   0xb   :  { %5929 = sst [smem:[#allocation52_spill]] %s5874_s10 }
   0xc   :  { %5930 = sst [smem:[#allocation53_spill]] %s5875_s11 }
   0xd   :  { %5931 = sst [smem:[#allocation54_spill]] %s5876_s12 }
   0xe   :  { %5932 = sst [smem:[#allocation55_spill]] %s5877_s13 }
   0xf   :  { %5933 = sst [smem:[#allocation56_spill]] %s5878_s14 }
  0x10   :  { %5934 = sst [smem:[#allocation57_spill]] %s5879_s15 }
  0x11   :  { %5935 = sst [smem:[#allocation58_spill]] %s5880_s16 }
  0x12   :  { %5936 = sst [smem:[#allocation59_spill]] %s5881_s17 }
  0x13   :  { %5937 = sst [smem:[#allocation60_spill]] %s5882_s18 }
  0x14   :  { %5938 = sst [smem:[#allocation61_spill]] %s5883_s19 }
  0x15   :  { %24 = vsyncpa [#allocation4], 0 }
  0x16   :  { %26 = vsyncpa [#allocation4 + $0x1], 0 }
  0x17   :  { %27 = vsyncpa [#allocation6], 0 }
  0x18   :  { %28 = vsyncpa [#allocation9], 0 }
  0x19   :  { %29 = vsyncpa [#allocation12], 0 }
  0x1a   :  { %31 = vsyncpa [#allocation12 + $0x1], 0 }
  0x1b   :  { %32 = vsyncpa [#allocation15], 0 }
  0x1c   :  { %34 = vsyncpa [#allocation15 + $0x1], 0 }
  0x1d   :  { %35 = vsyncpa [#allocation18], 0 }
  0x1e   :  { %37 = vsyncpa [#allocation18 + $0x1], 0  ;;  %s4948_s0 = smov 0   ;;  %s4950_s30 = smov 0  }
  0x1f   :  { %s4952_s20 = smov 0   ;;  %s4954_s21 = smov 0  }
  0x20   :  { %s4956_s1 = smov 0   ;;  %s4958_s22 = smov 0  }
  0x21   :  { %s4960_s2 = smov 0   ;;  %s4962_s23 = smov 0  }
  0x22   :  { %s4964_s24 = smov 0   ;;  %s4966_s25 = smov 0  }
  0x23   :  { %s4968_s3 = smov 0  }
  0x24 LB: > { %5939 = sst [smem:[#allocation26_spill]] %s4786_s30  ;;  %s5884_s26 = sadd.s32 4294967295, %s4822_s3   ;;  %s4822_s3 = sphi %s4968_s3, %s43_s3   ;;  %s4818_s25 = sphi %s4966_s25, %s6037_s25   ;;  %s4814_s24 = sphi %s4964_s24, %s6036_s24   ;;  %s4810_s23 = sphi %s4962_s23, %s6035_s23   ;;  %s4806_s2 = sphi %s4960_s2, %s6034_s2   ;;  %s4802_s22 = sphi %s4958_s22, %s6033_s22   ;;  %s4798_s1 = sphi %s4956_s1, %s6032_s1   ;;  %s4794_s21 = sphi %s4954_s21, %s6031_s21   ;;  %s4790_s20 = sphi %s4952_s20, %s6030_s20   ;;  %s4786_s30 = sphi %s4950_s30, %s6029_s30   ;;  %s4782_s0 = sphi %s4948_s0, %s6028_s0  }
  0x25   : > { %5940 = sst [smem:[#allocation27_spill]] %s4790_s20  ;;  %p3595_p0 = scmp.ge.s32.totalorder %s4822_s3, 1 }
  0x26   : > { %5941 = sst [smem:[#allocation28_spill]] %s4798_s1  ;;  %p5007_p1 = scmp.eq.s32.totalorder %s5884_s26, 0 }
  0x27   : > { %5942 = sst [smem:[#allocation29_spill]] %s4802_s22  ;;  %p560_p2 = scmp.lt.s32.totalorder %s4822_s3, 5 }
  0x28   : > { %5943 = sst [smem:[#allocation30_spill]] %s4806_s2  ;;  %s4824_s29 = smov [#allocation5]  }
  0x29   : > { %5944 = sst [smem:[#allocation31_spill]] %s4810_s23  ;;  %p5012_p3 = pnand %p3595_p0, %p560_p2 }
  0x2a   : > { %5945 = sst [smem:[#allocation32_spill]] %s4814_s24  ;;  %s572_s19 = sshll.u32 %s4824_s29, 4  ;;  %s573_s19 = int_to_ptr.vmem [resolvable:$true] %s572_s19 }
  0x2b   : > { %5946 = sst [smem:[#allocation33_spill]] %s4818_s25  ;;  %p4026_p4 = pneg %p5012_p3 }
  0x2c   : > { %5947 = sst [smem:[#allocation34_spill]] %s4822_s3  ;;  %s4825_s26 = smov [#allocation8]  }
  0x2d   : > { %s5948_s27 = scalar_select %p5007_p1, 1, 0 }
  0x2e   : > { %s5950_s28 = scalar_select %p5012_p3, 1, 0 }
  0x2f   : > { %5949 = sst [smem:[#allocation35_spill]] %s5948_s27  ;;  %p5020_p5 = pnand %p4026_p4, %p5007_p1 }
  0x30   : > { %5951 = sst [smem:[#allocation36_spill]] %s5950_s28  ;;  %s597_s15 = sshll.u32 %s4825_s26, 4  ;;  %s598_s15 = int_to_ptr.vmem [resolvable:$true] %s597_s15 }
  0x31   : > { %p5896_p6 = pneg %p5020_p5  ;;  %s4423_s17 = scalar_lea.vmem %s573_s19, 1536 }
  0x32   : > { %p4424_p7 = scmp.ne.s32.totalorder %s573_s19, %s4423_s17  ;;  %p4431_p10 = scmp.lt.s32.totalorder %s573_s19, %s573_s19 }
  0x33   : > { %p4432_p11 = scmp.lt.s32.totalorder %s4423_s17, %s4423_s17 }
  0x34   : > { %p4426_p8 = pnand %p4424_p7, %p5896_p6 }
  0x35   : > { %p4433_p12 = por %p4432_p11, %p4431_p10 }
  0x36   : > { %p4427_p9 = pneg %p4426_p8 }
  0x38   : > { %p4434_p13 = pnand %p4433_p12, %p4427_p9 }
  0x3a   : > { %4437 = shalt.err (!%p4434_p13)
}
  0x3b   : > { %s5887_s29 = smov 64   ;;  %s5889_s13 = smov 4  }
  0x3c   : > { %s5953_s11 = sld [smem:[#allocation43_spill]]  ;;  %s4449_s10 = scalar_lea.vmem %s598_s15, 16 }
  0x3d   : > { %p4450_p0 = scmp.ne.s32.totalorder %s598_s15, %s4449_s10  ;;  %s4456_s17 = scalar_lea.vmem %s598_s15, 32 }
  0x3e   : > { %p4457_p7 = scmp.lt.s32.totalorder %s598_s15, %s598_s15  ;;  %p4458_p8 = scmp.lt.s32.totalorder %s4456_s17, %s4449_s10 }
  0x3f   : > { %p4452_p2 = pnand %p4450_p0, %p5896_p6 }
  0x40   : > { %p4459_p9 = por %p4458_p8, %p4457_p7 }
  0x41   : > { %p4453_p4 = pneg %p4452_p2 }
  0x42   : > { %4029 = dma.hbm_to_vmem [thread:$0]  (!%p5020_p5), %s5953_s11, 1536, %s573_s19, [#allocation6], %s5887_s29, %s5887_s29, %s5889_s13  }
  0x43   : > { %p4460_p10 = pnand %p4459_p9, %p4453_p4 }
  0x45   : > { %4463 = shalt.err (!%p4460_p10)
}
  0x46   : > { %s5954_s2 = sld [smem:[#allocation45_spill]]  ;;  %s52_s8 = sadd.s32 1, %s4814_s24 }
  0x47   : > { %p5895_p11 = scmp.eq.s32.totalorder %s4822_s3, 0  ;;  %p5047_p12 = scmp.ge.s32.totalorder %s52_s8, 2 }
  0x48   : > { %s198_s10 = sadd.s32 1, %s4790_s20  ;;  %p205_p13 = scmp.ne.s32.totalorder %s4790_s20, %s4786_s30 }
  0x49   : > { %p211_p0 = scmp.ne.s32.totalorder %s4786_s30, %s4782_s0  ;;  %s6039_s8 = smov (%p5047_p12, %s52_s8), 0 }
  0x4a   : > { %5956 = sst [smem:[#allocation37_spill]] %s6039_s8  ;;  %p5062_p2 = por %p205_p13, %p5895_p11 }
  0x4b   : > { %p5068_p4 = por %p211_p0, %p5007_p1  ;;  %s195_s19 = ssub.s32 %s4814_s24, %s6039_s8 }
  0x4c   : > { %4035 = dma.hbm_to_vmem [thread:$0]  (!%p5020_p5), %s5954_s2, 16, %s598_s15, [#allocation9]  }
  0x4d   : > { %s5958_s15 = scalar_select %p5068_p4, 1, 0 }
  0x4e   : > { %p5894_p7 = scmp.lt.s32.totalorder %s4822_s3, 4  ;;  %p196_p8 = scmp.eq.s32.totalorder %s195_s19, 0 }
  0x4f   : > { %5959 = sst [smem:[#allocation38_spill]] %s5958_s15  ;;  %s5076_s2 = sand.u32 1, %s4822_s3  }
  0x50   : > { %s5079_s0 = sand.u32 1, %s4790_s20   ;;  %s5897_s26 = sshll.u32 %s4814_s24, 4 }
  0x51   : > { %s5082_s23 = scalar_select %p196_p8, %s4790_s20, %s198_s10  }
  0x52   : > { %s5961_s6 = sld [smem:[#allocation48_spill]]  ;;  %s651_s30 = scalar_lea.vmem [#allocation11], %s5079_s0 }
  0x53   : > { %5960 = sst [smem:[#allocation39_spill]] %s5082_s23  ;;  %s658_s28 = sshll.u32 %s651_s30, 4  ;;  %s659_s28 = int_to_ptr.vmem [resolvable:$true] %s658_s28 }
  0x54   : > { %p5095_p9 = pnand %p5894_p7, %p5062_p2  ;;  %s5903_s8 = scalar_lea.sflag [#allocation12], %s5076_s2 }
  0x55   : > { %s4477_s23 = scalar_lea.vmem %s659_s28, 16  ;;  %s4828_s30 = smov [#allocation11]  }
  0x56   : > { %s5962_s19 = scalar_select %p5095_p9, 1, 0 }
  0x57   : > { %p5102_p10 = pneg %p5095_p9  ;;  %p4478_p13 = scmp.ne.s32.totalorder %s659_s28, %s4477_s23 }
  0x58   : > { %s656_s13 = scalar_lea.hbm %s5961_s6, %s5897_s26  ;;  %s4482_s29 = sshll.u32 %s4828_s30, 4  ;;  %s4483_s29 = int_to_ptr.vmem [resolvable:$false] %s4482_s29 }
  0x59   : > { %p4480_p0 = pnand %p4478_p13, %p5102_p10  ;;  %s4484_s11 = scalar_lea.vmem %s4483_s29, 32 }
  0x5a   : > { %p4485_p2 = scmp.lt.s32.totalorder %s659_s28, %s4483_s29  ;;  %p4486_p7 = scmp.lt.s32.totalorder %s4484_s11, %s4477_s23 }
  0x5b   : > { %p4481_p8 = pneg %p4480_p0 }
  0x5c   : > { %p4487_p11 = por %p4486_p7, %p4485_p2 }
  0x5e   : > { %p4488_p6 = pnand %p4487_p11, %p4481_p8 }
  0x60   : > { %4491 = shalt.err (!%p4488_p6)
}
  0x61   : > { %4045 = dma.hbm_to_vmem [thread:$0]  (!%p5095_p9), %s656_s13, 16, %s659_s28, %s5903_s8  }
  0x62   : > { %s3606_s17 = sshll.u32 %s5079_s0, 6  ;;  %s3768_s26 = sshll.u32 %s4814_s24, 10 }
  0x63   : > { %s5964_s9 = sld [smem:[#allocation51_spill]]  ;;  %s697_s23 = scalar_lea.vmem [#allocation14], %s3606_s17 }
  0x64   : > { %s704_s11 = sshll.u32 %s697_s23, 4  ;;  %s3610_s20 = sshll.u32 %s5079_s0, 8  ;;  %s705_s11 = int_to_ptr.vmem [resolvable:$true] %s704_s11 }
  0x65   : > { %s5906_s15 = scalar_lea.sflag [#allocation15], %s5076_s2  ;;  %s4505_s7 = scalar_lea.vmem %s705_s11, 1024 }
  0x66   : > { %p4506_p6 = scmp.ne.s32.totalorder %s705_s11, %s4505_s7  ;;  %s4829_s4 = smov [#allocation14]  }
  0x67   : > { %s4510_s27 = sshll.u32 %s4829_s4, 4  ;;  %s4511_s27 = int_to_ptr.vmem [resolvable:$false] %s4510_s27 }
  0x68   : > { %p4508_p11 = pnand %p4506_p6, %p5102_p10  ;;  %s4512_s13 = scalar_lea.vmem %s4511_s27, 2048 }
  0x69   : > { %s703_s29 = scalar_lea.hbm %s5964_s9, %s3768_s26  ;;  %p4513_p13 = scmp.lt.s32.totalorder %s705_s11, %s4511_s27 }
  0x6a   : > { %p4509_p7 = pneg %p4508_p11  ;;  %p4514_p0 = scmp.lt.s32.totalorder %s4512_s13, %s4505_s7 }
  0x6c   : > { %p4515_p8 = por %p4514_p0, %p4513_p13 }
  0x6e   : > { %p4516_p2 = pnand %p4515_p8, %p4509_p7 }
  0x70   : > { %4519 = shalt.err (!%p4516_p2)
}
  0x71   : > { %s5965_s6 = smov 4   ;;  %s5966_s28 = smov 64  }
  0x72   : > { %4051 = dma.hbm_to_vmem [thread:$0]  (!%p5095_p9), %s703_s29, 1024, %s705_s11, %s5906_s15, %s5966_s28, %s5966_s28, %s5965_s6  }
  0x73   : > { %s3769_s4 = sshll.u32 %s4814_s24, 12  ;;  %s753_s26 = scalar_lea.vmem [#allocation17], %s3610_s20 }
  0x74   : > { %s760_s27 = sshll.u32 %s753_s26, 4  ;;  %s5967_s14 = sld [smem:[#allocation56_spill]]  ;;  %s761_s27 = int_to_ptr.vmem [resolvable:$true] %s760_s27 }
  0x75   : > { %s5911_s23 = scalar_lea.sflag [#allocation18], %s5076_s2  ;;  %s4533_s13 = scalar_lea.vmem %s761_s27, 4096 }
  0x76   : > { %p4534_p6 = scmp.ne.s32.totalorder %s761_s27, %s4533_s13  ;;  %s4830_s8 = smov [#allocation17]  }
  0x77   : > { %s4538_s9 = sshll.u32 %s4830_s8, 4  ;;  %s4539_s9 = int_to_ptr.vmem [resolvable:$false] %s4538_s9 }
  0x78   : > { %p4536_p11 = pnand %p4534_p6, %p5102_p10  ;;  %s4540_s3 = scalar_lea.vmem %s4539_s9, 8192 }
  0x79   : > { %p4541_p13 = scmp.lt.s32.totalorder %s761_s27, %s4539_s9  ;;  %p4542_p0 = scmp.lt.s32.totalorder %s4540_s3, %s4533_s13 }
  0x7a   : > { %s759_s30 = scalar_lea.hbm %s5967_s14, %s3769_s4  ;;  %p4537_p7 = pneg %p4536_p11 }
  0x7b   : > { %p4543_p8 = por %p4542_p0, %p4541_p13 }
  0x7d   : > { %p4544_p2 = pnand %p4543_p8, %p4537_p7 }
  0x7f   : > { %4547 = shalt.err (!%p4544_p2)
}
  0x80   : > { %s4831_s29 = smov 256   ;;  %s4832_s11 = smov 16  }
  0x81   : > { %4057 = dma.hbm_to_vmem [thread:$0]  (!%p5095_p9), %s759_s30, 4096, %s761_s27, %s5911_s23, %s4831_s29, %s4831_s29, %s4832_s11  }
  0x82   : > { %s5968_s26 = sshll.u32 %s4814_s24, 4  ;;  %s5969_s12 = sld [smem:[#allocation54_spill]] }
  0x83   : > { %s5970_s16 = sld [smem:[#allocation58_spill]]  ;;  %s5155_s15 = scalar_lea.vmem [#allocation19], %s3610_s20 }
  0x84   : > { %s4833_s28 = smov [#allocation7]   ;;  %p5971_p11 = pneg %p5020_p5 }
  0x85   : > { %s586_s6 = sshll.u32 %s4833_s28, 4  ;;  %s587_s6 = int_to_ptr.vmem [resolvable:$true] %s586_s6 }
  0x86   : > { %s4559_s27 = scalar_lea.vmem %s587_s6, 16  ;;  %s4566_s30 = scalar_lea.vmem %s587_s6, 32 }
  0x87   : > { %p4560_p6 = scmp.ne.s32.totalorder %s587_s6, %s4559_s27  ;;  %p4567_p0 = scmp.lt.s32.totalorder %s587_s6, %s587_s6 }
  0x88   : > { %s5146_s17 = scalar_lea.hbm %s5969_s12, %s5968_s26  ;;  %p4568_p8 = scmp.lt.s32.totalorder %s4566_s30, %s4559_s27 }
  0x89   : > { %s5151_s13 = scalar_lea.hbm %s5970_s16, %s3769_s4  ;;  %p4562_p7 = pnand %p4560_p6, %p5971_p11 }
  0x8a   : > { %p4569_p2 = por %p4568_p8, %p4567_p0 }
  0x8b   : > { %p4563_p13 = pneg %p4562_p7 }
  0x8d   : > { %p4570_p4 = pnand %p4569_p2, %p4563_p13 }
  0x8f   : > { %4573 = shalt.err (!%p4570_p4)
}
  0x90   : > { %s5972_s29 = sld [smem:[#allocation44_spill]]  ;;  %s4834_s28 = smov [#allocation10]  }
  0x91   : > { %s607_s11 = sshll.u32 %s4834_s28, 4  ;;  %p5973_p6 = pmov %p5971_p11  ;;  %s608_s11 = int_to_ptr.vmem [resolvable:$true] %s607_s11 }
  0x92   : > { %s4585_s26 = scalar_lea.vmem %s608_s11, 384  ;;  %p4593_p9 = scmp.lt.s32.totalorder %s608_s11, %s608_s11 }
  0x93   : > { %p4586_p3 = scmp.ne.s32.totalorder %s608_s11, %s4585_s26  ;;  %p4594_p0 = scmp.lt.s32.totalorder %s4585_s26, %s4585_s26 }
  0x95   : > { %p4588_p11 = pnand %p4586_p3, %p5973_p6  ;;  %p4595_p13 = por %p4594_p0, %p4593_p9 }
  0x96   : > { %4032 = dma.hbm_to_vmem [thread:$0]  (!%p5020_p5), %s5972_s29, 16, %s587_s6, [#allocation6]  }
  0x97   : > { %p4589_p7 = pneg %p4588_p11 }
  0x99   : > { %p4596_p4 = pnand %p4595_p13, %p4589_p7 }
  0x9b   : > { %4599 = shalt.err (!%p4596_p4)
}
  0x9c   : > { %s5912_s7 = smov 128   ;;  %s5974_s6 = sld [smem:[#allocation34_spill]] }
  0x9d   : > { %s5913_s9 = smov 8   ;;  %s5976_s30 = sld [smem:[#allocation46_spill]] }
  0x9e   : > { %s55_s20 = sadd.s32 1, %s4818_s25  ;;  %s62_s4 = sadd.s32 1, %s4802_s22 }
  0x9f   : > { %s6041_s20 = smov (!%p5047_p12, %s55_s20), %s4818_s25  ;;  %p69_p3 = scmp.ne.s32.totalorder %s4802_s22, %s4798_s1 }
  0xa0   : > { %p75_p9 = scmp.ne.s32.totalorder %s4798_s1, %s4794_s21  ;;  %p57_p8 = scmp.ge.s32.totalorder %s6041_s20, 2 }
  0xa1   : > { %s621_s29 = sand.u32 1, %s4802_s22   ;;  %s5980_s3 = sld [smem:[#allocation42_spill]] }
  0xa2   : > { %p5977_p2 = scmp.eq.s32.totalorder %s5974_s6, 0  ;;  %p5191_p11 = por %p5007_p1, %p75_p9 }
  0xa3   : > { %4038 = dma.hbm_to_vmem [thread:$0]  (!%p5020_p5), %s5976_s30, 384, %s608_s11, [#allocation9], %s5912_s7, %s5912_s7, %s5913_s9  }
  0xa4   : > { %p71_p6 = por %p5977_p2, %p69_p3  ;;  %s6043_s20 = smov (%p57_p8, %s6041_s20), 0 }
  0xa5   : > { %5979 = sst [smem:[#allocation40_spill]] %s6043_s20  ;;  %s3601_s5 = sshll.u32 %s621_s29, 4 }
  0xa6   : > { %s59_s28 = ssub.s32 %s4818_s25, %s6043_s20  ;;  %s3767_s11 = sshll.u32 %s4818_s25, 8 }
  0xa7   : > { %p60_p5 = scmp.eq.s32.totalorder %s59_s28, 0  ;;  %s631_s27 = scalar_lea.hbm %s5980_s3, %s3767_s11 }
  0xa8   : > { %s625_s30 = scalar_lea.vmem [#allocation3], %s3601_s5  ;;  %p5982_p12 = scmp.lt.s32.totalorder %s5974_s6, 4 }
  0xa9   : > { %s632_s23 = sshll.u32 %s625_s30, 4  ;;  %s3991_s7 = smul.u32 192, %s5079_s0  ;;  %s633_s23 = int_to_ptr.vmem [resolvable:$true] %s632_s23 }
  0xaa   : > { %s5204_s14 = scalar_select %p60_p5, %s4802_s22, %s62_s4  }
  0xab   : > { %p5208_p7 = pnand %p5982_p12, %p71_p6  ;;  %s3992_s9 = smul.u32 3072, %s4814_s24 }
  0xac   : > { %5981 = sst [smem:[#allocation41_spill]] %s5204_s14  ;;  %s622_s12 = scalar_lea.sflag [#allocation4], %s621_s29 }
  0xad   : > { %p4602_p0 = pneg %p5208_p7  ;;  %s4613_s28 = scalar_lea.vmem %s633_s23, 256 }
  0xae   : > { %p4614_p13 = scmp.ne.s32.totalorder %s633_s23, %s4613_s28  ;;  %s4837_s5 = smov [#allocation3]  }
  0xaf   : > { %s4618_s11 = sshll.u32 %s4837_s5, 4  ;;  %s4619_s11 = int_to_ptr.vmem [resolvable:$false] %s4618_s11 }
  0xb0   : > { %p4616_p4 = pnand %p4614_p13, %p4602_p0  ;;  %s4620_s4 = scalar_lea.vmem %s4619_s11, 512 }
  0xb1   : > { %p4621_p9 = scmp.lt.s32.totalorder %s633_s23, %s4619_s11  ;;  %p4622_p8 = scmp.lt.s32.totalorder %s4620_s4, %s4613_s28 }
  0xb2   : > { %p4617_p3 = pneg %p4616_p4 }
  0xb3   : > { %p4623_p2 = por %p4622_p8, %p4621_p9 }
  0xb5   : > { %p4624_p6 = pnand %p4623_p2, %p4617_p3 }
  0xb7   : > { %4627 = shalt.err (!%p4624_p6)
}
  0xb8   : > { %s5984_s6 = smov 8   ;;  %s5985_s26 = smov 128  }
  0xb9   : > { %4042 = dma.hbm_to_vmem [thread:$0]  (!%p5208_p7), %s631_s27, 256, %s633_s23, %s622_s12, %s5985_s26, %s5985_s26, %s5984_s6  }
  0xba   : > { %s5986_s3 = sld [smem:[#allocation49_spill]]  ;;  %s669_s16 = scalar_lea.vmem [#allocation13], %s3991_s7 }
  0xbb   : > { %s676_s5 = sshll.u32 %s669_s16, 4  ;;  %s4838_s28 = smov [#allocation13]   ;;  %s677_s5 = int_to_ptr.vmem [resolvable:$true] %s676_s5 }
  0xbc   : > { %s4641_s20 = scalar_lea.vmem %s677_s5, 3072  ;;  %s4646_s11 = sshll.u32 %s4838_s28, 4  ;;  %s4647_s11 = int_to_ptr.vmem [resolvable:$false] %s4646_s11 }
  0xbd   : > { %p4642_p5 = scmp.ne.s32.totalorder %s677_s5, %s4641_s20  ;;  %s4648_s8 = scalar_lea.vmem %s4647_s11, 6144 }
  0xbe   : > { %p4649_p13 = scmp.lt.s32.totalorder %s677_s5, %s4647_s11  ;;  %p4650_p4 = scmp.lt.s32.totalorder %s4648_s8, %s4641_s20 }
  0xbf   : > { %p4644_p12 = pnand %p4642_p5, %p5102_p10 }
  0xc0   : > { %s675_s30 = scalar_lea.hbm %s5986_s3, %s3992_s9  ;;  %p4651_p3 = por %p4650_p4, %p4649_p13 }
  0xc1   : > { %p4645_p0 = pneg %p4644_p12 }
  0xc3   : > { %p4652_p7 = pnand %p4651_p3, %p4645_p0 }
  0xc5   : > { %4655 = shalt.err (!%p4652_p7)
}
  0xc6   : > { %s4839_s12 = smov 192   ;;  %s4840_s16 = smov 12  }
  0xc7   : > { %p5987_p9 = scmp.ne.s32.totalorder %s5962_s19, 0  ;;  %s5988_s23 = scalar_lea.sflag [#allocation12], %s5076_s2 }
  0xc8   : > { %s5989_s7 = sshll.u32 %s5155_s15, 4  ;;  %s729_s9 = scalar_lea.vmem [#allocation16], %s5079_s0  ;;  %s5232_s7 = int_to_ptr.vmem [resolvable:$true] %s5989_s7 }
  0xc9   : > { %4048 = dma.hbm_to_vmem [thread:$0]  (!%p5987_p9), %s675_s30, 3072, %s677_s5, %s5988_s23, %s4839_s12, %s4839_s12, %s4840_s16  }
  0xca   : > { %s736_s27 = sshll.u32 %s729_s9, 4  ;;  %s4841_s4 = smov [#allocation16]   ;;  %s737_s27 = int_to_ptr.vmem [resolvable:$true] %s736_s27 }
  0xcb   : > { %s4669_s20 = scalar_lea.vmem %s737_s27, 16  ;;  %s4674_s6 = sshll.u32 %s4841_s4, 4  ;;  %s4675_s6 = int_to_ptr.vmem [resolvable:$false] %s4674_s6 }
  0xcc   : > { %p4670_p8 = scmp.ne.s32.totalorder %s737_s27, %s4669_s20  ;;  %s4676_s26 = scalar_lea.vmem %s4675_s6, 32 }
  0xcd   : > { %p4677_p5 = scmp.lt.s32.totalorder %s737_s27, %s4675_s6  ;;  %p4678_p12 = scmp.lt.s32.totalorder %s4676_s26, %s4669_s20 }
  0xce   : > { %p4672_p2 = pnand %p4670_p8, %p5102_p10 }
  0xcf   : > { %p4679_p0 = por %p4678_p12, %p4677_p5 }
  0xd0   : > { %p4673_p6 = pneg %p4672_p2 }
  0xd2   : > { %p4680_p13 = pnand %p4679_p0, %p4673_p6 }
  0xd4   : > { %4683 = shalt.err (!%p4680_p13)
}
  0xd5   : > { %s5990_s15 = scalar_lea.sflag [#allocation15], %s5076_s2  ;;  %s4697_s0 = scalar_lea.vmem %s5232_s7, 4096 }
  0xd6   : > { %4054 = dma.hbm_to_vmem [thread:$0]  (!%p5987_p9), %s5146_s17, 16, %s737_s27, %s5990_s15  }
  0xd7   : > { %p4698_p4 = scmp.ne.s32.totalorder %s5232_s7, %s4697_s0  ;;  %s4842_s29 = smov [#allocation19]  }
  0xd8   : > { %s4702_s21 = sshll.u32 %s4842_s29, 4  ;;  %s4703_s21 = int_to_ptr.vmem [resolvable:$false] %s4702_s21 }
  0xd9   : > { %p4700_p3 = pnand %p4698_p4, %p5102_p10  ;;  %s4704_s3 = scalar_lea.vmem %s4703_s21, 8192 }
  0xda   : > { %p4705_p8 = scmp.lt.s32.totalorder %s5232_s7, %s4703_s21  ;;  %p4706_p2 = scmp.lt.s32.totalorder %s4704_s3, %s4697_s0 }
  0xdb   : > { %p4701_p7 = pneg %p4700_p3 }
  0xdc   : > { %p4707_p6 = por %p4706_p2, %p4705_p8 }
  0xde   : > { %p4708_p5 = pnand %p4707_p6, %p4701_p7 }
  0xe0   : > { %4711 = shalt.err (!%p4708_p5)
}
  0xe1   : > { %s5991_s30 = smov 4   ;;  %s5992_s5 = smov 64  }
  0xe2   : > { %s5993_s17 = scalar_lea.sflag [#allocation18], %s5076_s2  ;;  %s5994_s10 = sld [smem:[#allocation36_spill]] }
  0xe3   : > { %4060 = dma.hbm_to_vmem [thread:$0]  (!%p5987_p9), %s5151_s13, 4096, %s5232_s7, %s5993_s17, %s5992_s5, %s5992_s5, %s5991_s30  }
  0xe8   : > { %p5995_p10 = scmp.ne.s32.totalorder %s5994_s10, 0 }
  0xe9   : > { %s814_s28 = sand.u32 (!%p5995_p10), 1, %s4798_s1  }
  0xea   : > { %812 = sbr.rel (%p5995_p10) target bundleno = 3213 (0xc8d), region = 96  ;;  %s5259_s11 = sshll.u32 (!%p5995_p10), %s814_s28, 4 }
  0xeb   : > { %s815_s8 = scalar_lea.sflag (!%p5995_p10), [#allocation4], %s814_s28 }
  0xef   : > { %4757 = dma.done.wait (%p5191_p11), %s815_s8, 256  }
  0xf0   : > { %4759 = vsyncadd (%p5191_p11), %s815_s8, 4294967040 }
  0xf1   : > { %4761 = dma.done.wait (%p5007_p1), [#allocation6], 1552  }
  0xf2   : > { %4763 = vsyncadd (%p5007_p1), [#allocation6], 4294965744 }
  0xf3   : > { %4765 = dma.done.wait (%p5007_p1), [#allocation9], 400  }
  0xf4   : > { %4767 = vsyncadd (%p5007_p1), [#allocation9], 4294966896  ;;  %s5997_s19 = sld [smem:[#allocation34_spill]] }
  0xf5   : > { %s5999_s16 = sld [smem:[#allocation26_spill]] }
  0xf6   : > { %s6000_s23 = sld [smem:[#allocation38_spill]] }
  0xfa   : > { %s5998_s13 = sadd.s32 4294967295, %s5997_s19  }
  0xfb   : > { %s839_s7 = sand.u32 1, %s5998_s13   ;;  %s5277_s9 = sand.u32 1, %s5999_s16  }
  0xfc   : > { %s840_s18 = scalar_lea.sflag [#allocation12], %s839_s7  ;;  %p6001_p11 = scmp.ne.s32.totalorder %s6000_s23, 0 }
  0xfe   : > { %4769 = dma.done.wait (%p6001_p11), %s840_s18, 3088  }
  0xff   : > { %4771 = vsyncadd (%p6001_p11), %s840_s18, 4294964208  ;;  %s3993_s20 = smul.u32 192, %s5277_s9  ;;  %s3622_s4 = sshll.u32 %s5277_s9, 6 }
 0x100   : > { %s857_s26 = scalar_lea.sflag [#allocation15], %s839_s7  ;;  %s5288_s15 = scalar_lea.vmem [#allocation14], %s3622_s4 }
 0x101   : > { %s5286_s6 = scalar_lea.vmem [#allocation13], %s3993_s20 }
 0x102   : > { %4773 = dma.done.wait (%p6001_p11), %s857_s26, 1040  }
 0x103   : > { %4775 = vsyncadd (%p6001_p11), %s857_s26, 4294966256  ;;  %s3623_s0 = sshll.u32 %s5277_s9, 8  ;;  %s874_s21 = scalar_lea.sflag [#allocation18], %s839_s7 }
 0x104   : > { %s5296_s3 = scalar_lea.vmem [#allocation17], %s3623_s0 }
 0x105   : > { %4777 = dma.done.wait (%p6001_p11), %s874_s21, 8192  }
 0x106   : > { %4779 = vsyncadd (%p6001_p11), %s874_s21, 4294959104  ;;  %s6002_s30 = sld [smem:[#allocation30_spill]] }
 0x107   : > { %s6003_s5 = sld [smem:[#allocation31_spill]] }
 0x108   : > { %s6007_s27 = sld [smem:[#allocation50_spill]] }
 0x109   : > { %s6008_s14 = sld [smem:[#allocation55_spill]] }
 0x10a   : > { %s6009_s2 = sld [smem:[#allocation59_spill]] }
 0x10b   : > { %s6010_s23 = sld [smem:[#allocation57_spill]] }
 0x10c   : > { %p995_p1 = scmp.lt.s32.totalorder %s6002_s30, 1  ;;  %s6011_s4 = sld [smem:[#allocation60_spill]] }
 0x10d   : > { %p1021_p9 = scmp.lt.s32.totalorder %s6003_s5, 1  ;;  %s6012_s26 = sld [smem:[#allocation61_spill]] }
 0x10e   : > { %s5305_s17 = scalar_select %p995_p1, %s6002_s30, 1 }
 0x10f   : > { %s6045_s5 = smov (!%p1021_p9, %s6003_s5), 1  ;;  %p3627_p12 = scmp.ne.s32.totalorder %s6002_s30, 0 }
 0x110   : > { %s3994_s19 = smul.u32 3, %s5305_s17  ;;  %s1010_s22 = scalar_lea.vmem %s6008_s14, %s5305_s17 }
 0x111   : > { %s3625_s10 = sshll.u32 %s5305_s17, 2  ;;  %s1017_s1 = scalar_lea.vmem %s6009_s2, %s5305_s17 }
 0x112   : > { %s5324_s12 = scalar_lea.vmem %s6007_s27, %s3994_s19  ;;  %s5338_s7 = scalar_lea.vmem %s6010_s23, %s3625_s10 }
 0x113   : > { %s1020_s29 = scalar_lea.vmem %s6011_s4, %s5305_s17  ;;  %s3995_s27 = smul.u32 24, %s6045_s5 }
 0x114   : > { %s5349_s14 = scalar_lea.vmem [#allocation19], %s3623_s0  ;;  %1030 = sbr.rel (%p3627_p12) target bundleno = 535 (0x217), region = 144 }
 0x115   : > { %s5347_s24 = scalar_lea.vmem %s6012_s26, %s3995_s27  ;;  %s6013_s25 = scalar_lea.vmem (!%p3627_p12), [#allocation3], %s5259_s11 }
 0x116   : > { %s6014_s0 = smov (!%p3627_p12), %s6013_s25 }
 0x119   : > { %v4175_v0 = vld [vmem:[#allocation5 + $0x38] sm:$0xff]   ;;  %v4843_v1 = vmov 0   ;;  %v4176_v2 = vld [vmem:[#allocation5 + $0x30] sm:$0xff]   ;;  %v4177_v3 = vld [vmem:[#allocation5 + $0x28] sm:$0xff]   ;;  %vm1145_vm0 = vcmask 523264   ;;  %vm1193_vm1 = vcmask 1040384  }
 0x11a   : > { %1149 = vmatprep.subr.bf16.mxu0 %v4843_v1  ;;  %v4178_v4 = vld [vmem:[#allocation5 + $0x20] sm:$0xff]   ;;  %v4179_v6 = vld [vmem:[#allocation5 + $0x18] sm:$0xff]   ;;  %v4180_v7 = vld [vmem:[#allocation5 + $0x10] sm:$0xff]  }
 0x11b   : > { %1150 = vmatpush1.bf16.msra.mxu0 %v4175_v0  ;;  %v4189_v5 = vld [vmem:[%s6013_s25 + $0x4] ss:$8 sps:$4 sm:$0xff]   ;;  %v4187_v14 = vld [vmem:[%s6014_s0] ss:$8 sps:$4 sm:$0xff]   ;;  %v3628_v15 = vld [vmem:[#allocation7] ss:$0 sm:$0xff] }
 0x11c   : > { %1151 = vmatprep.subr.bf16.mxu0 %v4843_v1  ;;  %3643 = vmatprep.mubr.msk.bf16.mxu0 %vm1145_vm0, %v4189_v5  ;;  %v4181_v8 = vld [vmem:[#allocation5 + $0x8] sm:$0xff]   ;;  %v4182_v9 = vld [vmem:[#allocation5] sm:$0xff]   ;;  %v4183_v10 = vld [vmem:[#allocation5 + $0x58] sm:$0xff]  }
 0x11d   : > { %v4184_v11 = vld [vmem:[#allocation5 + $0x50] sm:$0xff]   ;;  %v4185_v12 = vld [vmem:[#allocation5 + $0x48] sm:$0xff]   ;;  %v4186_v13 = vld [vmem:[#allocation5 + $0x40] sm:$0xff]  }
 0x11e   : > { %v1190_v18 = vld [vmem:[#allocation8] sm:$0x1]  ;;  %v1201_v21 = vld [vmem:[#allocation10] sm:$0xff]  ;;  %v1203_v26 = vld [vmem:[#allocation10 + $0x10] sm:$0x1] }
 0x11f   : > { %1152 = vmatpush1.bf16.msra.mxu0 %v4176_v2  ;;  %v1202_v29 = vld [vmem:[#allocation10 + $0x8] sm:$0xff] }
 0x120   : > { %1153 = vmatprep.subr.bf16.mxu0 %v4843_v1 }
 0x123   : > { %1154 = vmatpush1.bf16.msra.mxu0 %v4177_v3 }
 0x124   : > { %1155 = vmatprep.subr.bf16.mxu0 %v4843_v1 }
 0x127   : > { %1156 = vmatpush1.bf16.msra.mxu0 %v4178_v4 }
 0x128   : > { %1157 = vmatprep.subr.bf16.mxu0 %v4843_v1 }
 0x12b   : > { %1158 = vmatpush1.bf16.msra.mxu0 %v4179_v6 }
 0x12c   : > { %1159 = vmatprep.subr.bf16.mxu0 %v4843_v1 }
 0x12f   : > { %1160 = vmatpush1.bf16.msra.mxu0 %v4180_v7 }
 0x130   : > { %1161 = vmatprep.subr.bf16.mxu0 %v4843_v1 }
 0x133   : > { %1162 = vmatpush1.bf16.msra.mxu0 %v4181_v8 }
 0x134   : > { %1163 = vmatprep.subr.bf16.mxu0 %v4843_v1 }
 0x137   : > { %1164 = vmatpush1.bf16.msra.mxu0 %v4182_v9 }
 0x138   : > { %1173 = vmatprep.subr.bf16.mxu0 %v4843_v1 }
 0x13b   : > { %1174 = vmatpush2.bf16.msra.mxu0 %v4183_v10 }
 0x13c   : > { %1175 = vmatprep.subr.bf16.mxu0 %v4843_v1 }
 0x13f   : > { %1176 = vmatpush2.bf16.msra.mxu0 %v4184_v11 }
 0x140   : > { %1177 = vmatprep.subr.bf16.mxu0 %v4843_v1 }
 0x143   : > { %1178 = vmatpush2.bf16.msra.mxu0 %v4185_v12 }
 0x144   : > { %1179 = vmatprep.subr.bf16.mxu0 %v4843_v1 }
 0x147   : > { %1180 = vmatpush2.bf16.msra.mxu0 %v4186_v13 }
 0x14a   : > { %1182 = vmatmul.mubr.bf16.vlgmr.msra.gmra.mxu0 %v4187_v14 }
 0x20a   : > { %v1183_v16 = vpop.f32.mrf.mxu0 }
 0x20b   : > { %v1184_v17 = vadd.f32 %v3628_v15, %v1183_v16 }
 0x20c   : > { %v1185_v19 = vpop.f32.mrf.mxu0 }
 0x20d   : > { %v1194_v20 = vrot.slane %v1184_v17, 7 }
 0x20e   : > { %v1186_v22 = vpop.f32.mrf.mxu0 }
 0x20f   : > { %v1200_v23 = vsel %vm1193_vm1, %v1190_v18, %v1194_v20  ;;  %v1187_v24 = vadd.f32 %v3628_v15, %v1186_v22 }
 0x210   : > { %v1204_v25 = vadd.f32 %v1201_v21, %v1200_v23  ;;  %v1188_v27 = vpop.f32.mrf.mxu0 }
 0x211   : > { %v1195_v28 = vrot.slane %v1187_v24, 7 }
 0x212   : > { %1207 = vst [vmem:[#allocation2 + $0x10] sm:$0xff] %v1204_v25 }
 0x213   : > { %v1196_v30 = vsel %vm1193_vm1, %v1194_v20, %v1195_v28  ;;  %v1206_v31 = vadd.f32 %v1203_v26, %v1195_v28 }
 0x214   : > { %v1205_v32 = vadd.f32 %v1202_v29, %v1196_v30 }
 0x215   : > { %1209 = vst [vmem:[#allocation2 + $0x8] sm:$0x1] %v1206_v31 }
 0x216   : > { %1208 = vst [vmem:[#allocation2] sm:$0xff] %v1205_v32 }
 0x217 PF: > { %vm1219_vm2 = vcmask 1040384   ;;  %v4205_v41 = vld [vmem:[%s5286_s6 + $0xac] ss:$12 sps:$4 sm:$0xff]   ;;  %v4207_v42 = vld [vmem:[%s5286_s6 + $0xa8] ss:$12 sps:$4 sm:$0xff]   ;;  %v4844_v61 = vmov 0  }
 0x218   : > { %1455 = vmatprep.subr.bf16.mxu0 %v4205_v41  ;;  %v4208_v43 = vld [vmem:[%s5286_s6 + $0x94] ss:$12 sps:$4 sm:$0xff]   ;;  %v4210_v44 = vld [vmem:[%s5286_s6 + $0xb0] ss:$12 sps:$4 sm:$0xff]   ;;  %v4214_v47 = vld [vmem:[%s5286_s6 + $0x98] ss:$12 sps:$4 sm:$0xff]   ;;  %1487 = vmatprep.mubr.bf16.mxu0 %v4844_v61 }
 0x219   : > { %v5356_v33 = vld [vmem:[#allocation2 + $0x10] sm:$0xff]  ;;  %1456 = vmatpush1.bf16.msra.mxu0 %v4207_v42  ;;  %3879 = vmatprep.subr.bf16.mxu1 %v4210_v44  ;;  %v4216_v49 = vld [vmem:[%s5286_s6 + $0x64] ss:$12 sps:$4 sm:$0xff]   ;;  %v4222_v53 = vld [vmem:[%s5286_s6 + $0x68] ss:$12 sps:$4 sm:$0xff]   ;;  %s6015_s30 = sld [smem:[#allocation47_spill]] }
 0x21a   : > { %1215 = vadd.xlane.f32.xlu0 %v5356_v33  ;;  %v1227_v36 = vmul.f32 %v5356_v33, %v5356_v33  ;;  %v4211_v45 = vld [vmem:[%s5286_s6 + $0x90] ss:$12 sps:$4 sm:$0xff]   ;;  %1457 = vmatprep.subr.bf16.mxu0 %v4208_v43  ;;  %v4215_v48 = vld [vmem:[%s5286_s6 + $0x78] ss:$12 sps:$4 sm:$0xff]   ;;  %v4218_v50 = vld [vmem:[%s5286_s6 + $0x80] ss:$12 sps:$4 sm:$0xff]   ;;  %v1312_v43 = vlaneseq }
 0x21b   : > { %3880 = vmatpush3.bf16.msra.mxu1 %v4210_v44  ;;  %v4212_v46 = vld [vmem:[%s5286_s6 + $0x7c] ss:$12 sps:$4 sm:$0xff]   ;;  %v4219_v51 = vld [vmem:[%s5286_s6 + $0x60] ss:$12 sps:$4 sm:$0xff]   ;;  %v4230_v59 = vld [vmem:[%s5286_s6 + $0x38] ss:$12 sps:$4 sm:$0xff]  }
 0x21c   : > { %v5360_v35 = vld [vmem:[#allocation2 + $0x8] sm:$0x1]  ;;  %1230 = vadd.xlane.f32.xlu1 %v1227_v36  ;;  %3881 = vmatprep.subr.bf16.mxu1 %v4214_v47  ;;  %v4220_v52 = vld [vmem:[%s5286_s6 + $0x4c] ss:$12 sps:$4 sm:$0xff]   ;;  %v4223_v54 = vld [vmem:[%s5286_s6 + $0x48] ss:$12 sps:$4 sm:$0xff]  }
 0x21d   : > { %v5358_v34 = vld [vmem:[#allocation2] sm:$0xff]  ;;  %v1229_v38 = vmul.f32 %v5360_v35, %v5360_v35  ;;  %v1220_v39 = vsel %vm1219_vm2, %v5360_v35, 0.0  ;;  %1458 = vmatpush1.bf16.msra.mxu0 %v4211_v45  ;;  %v4224_v55 = vld [vmem:[%s5286_s6 + $0x34] ss:$12 sps:$4 sm:$0xff]   ;;  %v4231_v60 = vld [vmem:[%s5286_s6 + $0x18] ss:$12 sps:$4 sm:$0xff]  }
 0x21e   : > { %v1228_v37 = vmul.f32 %v5358_v34, %v5358_v34  ;;  %1217 = vadd.xlane.f32.xlu0 %v5358_v34  ;;  %1459 = vmatprep.subr.bf16.mxu0 %v4212_v46  ;;  %v4226_v56 = vld [vmem:[%s5286_s6 + $0x50] ss:$12 sps:$4 sm:$0xff]   ;;  %v4234_v63 = vld [vmem:[%s5286_s6 + $0x20] ss:$12 sps:$4 sm:$0xff]   ;;  %v4236_v1 = vld [vmem:[%s5286_s6 + $0x8] ss:$12 sps:$4 sm:$0xff]  }
 0x21f   : > { %v1234_v40 = vsel %vm1219_vm2, %v1229_v38, 0.0  ;;  %3882 = vmatpush3.bf16.msra.mxu1 %v4214_v47  ;;  %v4227_v57 = vld [vmem:[%s5286_s6 + $0x30] ss:$12 sps:$4 sm:$0xff]   ;;  %v4235_v0 = vld [vmem:[%s5286_s6] ss:$12 sps:$4 sm:$0xff]   ;;  %s6016_s5 = scalar_lea.vmem %s6015_s30, %s5305_s17  ;;  %s6017_s2 = scalar_lea.vmem [#allocation11], %s5277_s9 }
 0x220   : > { %1232 = vadd.xlane.f32.xlu1 %v1228_v37  ;;  %3883 = vmatprep.subr.bf16.mxu1 %v4218_v50  ;;  %v4228_v58 = vld [vmem:[%s5286_s6 + $0x1c] ss:$12 sps:$4 sm:$0xff]   ;;  %v4232_v62 = vld [vmem:[%s5286_s6 + $0x4] ss:$12 sps:$4 sm:$0xff]   ;;  %v5409_v44 = vshrl.u32 %v1312_v43, 7  ;;  %vm1560_vm3 = vcmask 261120  }
 0x221   : > { %1460 = vmatpush1.bf16.msra.mxu0 %v4215_v48  ;;  %v3644_v26 = vld [vmem:[%s6016_s5] ss:$0 sm:$0xff]  ;;  %vm1621_vm4 = vcmask 138240   ;;  %vm1628_vm5 = vcmask 131072   ;;  %s4846_s26 = smov 64   ;;  %s4847_s10 = smov 32  }
 0x222   : > { %1221 = vadd.xlane.f32.xlu0 %v1220_v39  ;;  %1461 = vmatprep.subr.bf16.mxu0 %v4216_v49  ;;  %v3645_v31 = vld [vmem:[%s6017_s2] ss:$0 sm:$0xff]  ;;  %v1322_v45 = vsub.s32 2, %v5409_v44  ;;  %vm2257_vm6 = vcmask 523264   ;;  %vm2261_vm7 = vcmask 785408   ;;  %s6018_s8 = sld [smem:[#allocation52_spill]] }
 0x223   : > { %3884 = vmatpush3.bf16.msra.mxu1 %v4218_v50  ;;  %v1310_v46 = vld [vmem:[%s5324_s12] sm:$0x7]  ;;  %s4845_s12 = smov 96   ;;  %s6020_s18 = sld [smem:[#allocation53_spill]] }
 0x224   : > { %1235 = vadd.xlane.f32.xlu1 %v1234_v40  ;;  %3885 = vmatprep.subr.bf16.mxu1 %v4222_v53  ;;  %v1323_v49 = vrot.slane %v1310_v46, %v1322_v45 }
 0x225   : > { %1462 = vmatpush1.bf16.msra.mxu0 %v4219_v51 }
 0x226   : > { %1463 = vmatprep.subr.bf16.mxu0 %v4220_v52 }
 0x227   : > { %3886 = vmatpush3.bf16.msra.mxu1 %v4222_v53 }
 0x228   : > { %3887 = vmatprep.subr.bf16.mxu1 %v4226_v56  ;;  %s6019_s13 = scalar_lea.vmem %s6018_s8, %s5305_s17 }
 0x229   : > { %1464 = vmatpush1.bf16.msra.mxu0 %v4223_v54  ;;  %v1318_v54 = vsub.s32 1, %v5409_v44  ;;  %s6021_s20 = scalar_lea.vmem %s6020_s18, %s5305_s17 }
 0x22a   : > { %1465 = vmatprep.subr.bf16.mxu0 %v4224_v55 }
 0x22b   : > { %3888 = vmatpush3.bf16.msra.mxu1 %v4226_v56 }
 0x22c   : > { %3889 = vmatprep.subr.bf16.mxu1 %v4230_v59 }
 0x22d   : > { %1466 = vmatpush1.bf16.msra.mxu0 %v4227_v57 }
 0x22e   : > { %1467 = vmatprep.subr.bf16.mxu0 %v4228_v58 }
 0x22f   : > { %3890 = vmatpush3.bf16.msra.mxu1 %v4230_v59  ;;  %v5421_v59 = vsel %vm1219_vm2, 65535, %v4844_v61 }
 0x230   : > { %3891 = vmatprep.subr.bf16.mxu1 %v4234_v63 }
 0x231   : > { %1468 = vmatpush1.bf16.msra.mxu0 %v4231_v60 }
 0x232   : > { %1469 = vmatprep.subr.bf16.mxu0 %v4232_v62 }
 0x233   : > { %3892 = vmatpush3.bf16.msra.mxu1 %v4234_v63 }
 0x234   : > { %3893 = vmatprep.subr.bf16.mxu1 %v4236_v1 }
 0x235   : > { %1470 = vmatpush1.bf16.msra.mxu0 %v4235_v0 }
 0x237   : > { %3894 = vmatpush3.bf16.msra.mxu1 %v4236_v1  ;;  %v1319_v1 = vrot.slane %v1310_v46, %v1318_v54 }
 0x2a3   : > { %v1216_v2 = vpop.xlane.xlu0 %1215 }
 0x2a4   : > { %v1224_v3 = vmul.f32 0.0078125, %v1216_v2 }
 0x2a5   : > { %v1231_v4 = vpop.xlane.xlu1 %1230 }
 0x2a6   : > { %v1240_v5 = vmul.f32 %v1224_v3, %v1224_v3  ;;  %v1237_v6 = vmul.f32 0.0078125, %v1231_v4  ;;  %v1246_v23 = vsub.f32 %v5356_v33, %v1224_v3 }
 0x2a7   : > { %v1218_v7 = vpop.xlane.xlu0 %1217 }
 0x2a8   : > { %v1243_v8 = vsub.f32 %v1237_v6, %v1240_v5  ;;  %v1225_v9 = vmul.f32 0.0078125, %v1218_v7 }
 0x2a9   : > { %v1233_v10 = vpop.xlane.xlu1 %1232 }
 0x2aa   : > { %v1249_v11 = vadd.f32 1e-06, %v1243_v8  ;;  %v1241_v12 = vmul.f32 %v1225_v9, %v1225_v9  ;;  %v1238_v13 = vmul.f32 0.0078125, %v1233_v10  ;;  %v1247_v27 = vsub.f32 %v5358_v34, %v1225_v9 }
 0x2ab   : > { %v1222_v14 = vpop.xlane.xlu0 %1221 }
 0x2ac   : > { %4325 = vrsqrt.f32 %v1249_v11  ;;  %v1244_v15 = vsub.f32 %v1238_v13, %v1241_v12  ;;  %v1226_v16 = vmul.f32 0.0078125, %v1222_v14 }
 0x2ad   : > { %v1236_v17 = vpop.xlane.xlu1 %1235 }
 0x2ae   : > { %v1250_v18 = vadd.f32 1e-06, %v1244_v15  ;;  %v1242_v19 = vmul.f32 %v1226_v16, %v1226_v16  ;;  %v1239_v20 = vmul.f32 0.0078125, %v1236_v17  ;;  %v1248_v32 = vsub.f32 %v5360_v35, %v1226_v16 }
 0x2af   : > { %v1314_v35 = vsub.s32 0, %v5409_v44 }
 0x2b0   : > { %4327 = vrsqrt.f32 %v1250_v18  ;;  %v1245_v21 = vsub.f32 %v1239_v20, %v1242_v19 }
 0x2b1   : > { %v1315_v48 = vrot.slane %v1310_v46, %v1314_v35 }
 0x2b2   : > { %v1251_v22 = vadd.f32 1e-06, %v1245_v21 }
 0x2b4   : > { %4329 = vrsqrt.f32 %v1251_v22 }
 0x2b9   : > { %v4326_v24 = vpop.eup %4325 }
 0x2ba   : > { %v1255_v25 = vmul.f32 %v4326_v24, %v1246_v23 }
 0x2bc   : > { %v1264_v30 = vmul.f32 %v3644_v26, %v1255_v25 }
 0x2bd   : > { %v4328_v28 = vpop.eup %4327 }
 0x2be   : > { %v1256_v29 = vmul.f32 %v4328_v28, %v1247_v27  ;;  %v1273_v38 = vadd.f32 %v3645_v31, %v1264_v30 }
 0x2c0   : > { %v1265_v36 = vmul.f32 %v3644_v26, %v1256_v29 }
 0x2c1   : > { %v4330_v37 = vpop.eup %4329 }
 0x2c2   : > { %v1274_v33 = vadd.f32 %v3645_v31, %v1265_v36  ;;  %v1257_v39 = vmul.f32 %v4330_v37, %v1248_v32 }
 0x2c4   : > { %v1276_v40 = vpack.c.bf16 %v1274_v33, %v1273_v38  ;;  %v1266_v41 = vmul.f32 %v3644_v26, %v1257_v39 }
 0x2c6   : > { %1488 = vmatmul.mubr.bf16.vlgmr.msra.gmra.mxu0 %v1276_v40  ;;  %3895 = vmatprep.mubr.bf16.mxu1 %v1276_v40  ;;  %v1275_v42 = vadd.f32 %v3645_v31, %v1266_v41 }
 0x2c7   : > { %1497 = vmatprep.mubr.bf16.mxu0 %v4844_v61 }
 0x2c8   : > { %v1277_v34 = vpack.c.bf16 %v1275_v42, %v1275_v42 }
 0x2ca   : > { %3896 = vmatmul.mubr.bf16.vlgmr.msra.gmra.mxu1 %v1277_v34 }
 0x2ce   : > { %1498 = vmatmul.mubr.bf16.gmra.mxu0 %v1277_v34 }
 0x386   : > { %v1489_v47 = vpop.f32.mrf.mxu0 }
 0x387   : > { %v1490_v53 = vadd.f32 %v1489_v47, %v1315_v48 }
 0x388   : > { %v1491_v50 = vpop.f32.mrf.mxu0 }
 0x389   : > { %v1492_v10 = vadd.f32 %v1491_v50, %v1319_v1 }
 0x38a   : > { %v1493_v51 = vpop.f32.mrf.mxu0  ;;  %v3897_v52 = vpop.f32.mrf.mxu1 }
 0x38b   : > { %v1494_v55 = vadd.f32 %v1493_v51, %v1315_v48  ;;  %v1549_v56 = vadd.f32 %v3897_v52, %v1323_v49 }
 0x38c   : > { %v1495_v57 = vpop.f32.mrf.mxu0  ;;  %v1540_v58 = vpop.f32.mrf.mxu1 }
 0x38d   : > { %v5423_v60 = vpack.c.bf16 %v1494_v55, %v1490_v53  ;;  %v5425_v62 = vpack.c.bf16 %v1549_v56, %v1549_v56  ;;  %v1496_v5 = vadd.f32 %v1495_v57, %v1319_v1  ;;  %v1541_v6 = vadd.f32 %v1540_v58, %v1323_v49 }
 0x38e   : > { %v1499_v63 = vpop.f32.mrf.mxu0  ;;  %v3898_v0 = vpop.f32.mrf.mxu1 }
 0x38f   : > { %3903 = vmatprep.mubr.msk.bf16.mxu0 %vm1560_vm3, %v5423_v60  ;;  %v1661_v2 = vand.u32 %v5421_v59, %v5425_v62  ;;  %v5437_v14 = vpack.c.bf16 %v1496_v5, %v1492_v10  ;;  %v1500_v17 = vadd.f32 %v1499_v63, %v1315_v48 }
 0x390   : > { %v1501_v3 = vpop.f32.mrf.mxu0  ;;  %v1543_v4 = vpop.f32.mrf.mxu1 }
 0x391   : > { %v1502_v7 = vadd.f32 %v1501_v3, %v1319_v1  ;;  %v1544_v8 = vadd.f32 %v1543_v4, %v1323_v49  ;;  %3907 = vmatprep.subr.bf16.mxu1 %v1661_v2  ;;  %v1568_v16 = vsel %vm1560_vm3, %v5437_v14, 0  ;;  %v5449_v18 = vpack.c.bf16 %v1500_v17, %v1500_v17 }
 0x392   : > { %v1503_v9 = vpop.f32.mrf.mxu0  ;;  %3908 = vmatpush3.bf16.msra.mxu1 %v1661_v2 }
 0x393   : > { %v5433_v11 = vpack.c.bf16 %v1502_v7, %v1502_v7  ;;  %v5435_v12 = vpack.c.bf16 %v1544_v8, %v1541_v6 }
 0x394   : > { %v1504_v13 = vpop.f32.mrf.mxu0 }
 0x395   : > { %3983 = vmatprep.subr.msk.bf16.mxu0 %vm1560_vm3, %v5433_v11  ;;  %3909 = vmatprep.subr.bf16.mxu1 %v5435_v12  ;;  %v1571_v15 = vsel %vm1560_vm3, %v5433_v11, 0 }
 0x396   : > { %3900 = vmatpush3.bf16.xpose.msra.mxu0 %v1571_v15  ;;  %3910 = vmatpush3.bf16.msra.mxu1 %v5435_v12 }
 0x397   : > { %3984 = vmatprep.subr.msk.bf16.mxu0 %vm1560_vm3, %v5437_v14 }
 0x39e   : > { %3902 = vmatpush3.bf16.xpose.msra.mxu0 %v1568_v16 }
 0x3a5   : > { %3904 = vmatmul.mubr.msk.bf16.vlgmr.msra.gmra.mxu0 %vm1560_vm3, %v5449_v18 }
 0x465   : > { %v3905_v19 = vpop.f32.mrf.mxu0 }
 0x466   : > { %v1629_v24 = vsel %vm1628_vm5, %v3905_v19, -inf }
 0x467   : > { %v1607_v20 = vpop.f32.mrf.mxu0 }
 0x468   : > { %v1622_v21 = vsel %vm1621_vm4, %v1607_v20, -inf }
 0x469   : > { %1623 = vmax.xlane.f32.xlu0 %v1622_v21  ;;  %v3906_v22 = vpop.f32.mrf.mxu0 }
 0x46b   : > { %v1610_v23 = vpop.f32.mrf.mxu0 }
 0x46c   : > { %v1625_v25 = vsel %vm1621_vm4, %v1610_v23, -inf }
 0x46d   : > { %1630 = vmax.xlane.f32.xlu0 %v1629_v24  ;;  %1626 = vmax.xlane.f32.xlu1 %v1625_v25 }
 0x47e   : > { %1727 = vrot.lane.b32.xlu1 %v5433_v11, %s4845_s12 }
 0x482   : > { %1719 = vrot.lane.b32.xlu1 %v5423_v60, %s4845_s12 }
 0x483   : > { %1725 = vrot.lane.b32.xlu0 %v5437_v14, %s4845_s12 }
 0x486   : > { %1894 = vrot.lane.b32.xlu1 %v5433_v11, %s4846_s26 }
 0x487   : > { %1892 = vrot.lane.b32.xlu0 %v5437_v14, %s4846_s26 }
 0x48a   : > { %1721 = vrot.lane.b32.xlu1 %v5449_v18, %s4845_s12 }
 0x48b   : > { %1890 = vrot.lane.b32.xlu0 %v5449_v18, %s4846_s26 }
 0x48e   : > { %1888 = vrot.lane.b32.xlu1 %v5423_v60, %s4846_s26 }
 0x4f2   : > { %v1624_v26 = vpop.xlane.xlu0 %1623 }
 0x4f3   : > { %v1632_v27 = vsub.f32 %v1607_v20, %v1624_v26 }
 0x4f5   : > { %v1635_v28 = vmul.f32 1.442695, %v1632_v27 }
 0x4f6   : > { %v1631_v29 = vpop.xlane.xlu0 %1630  ;;  %v1627_v30 = vpop.xlane.xlu1 %1626 }
 0x4f7   : > { %v1634_v31 = vsub.f32 %v3905_v19, %v1631_v29  ;;  %v1633_v32 = vsub.f32 %v1610_v23, %v1627_v30  ;;  %4331 = vpow2.f32 %v1635_v28 }
 0x4f9   : > { %v1639_v36 = vmul.f32 1.442695, %v1634_v31  ;;  %v1637_v37 = vmul.f32 1.442695, %v1633_v32 }
 0x4fa   : > { %v1728_v38 = vpop.permute.xlu1 %1727  ;;  %v1726_v46 = vpop.permute.xlu0 %1725 }
 0x4fb   : > { %4333 = vpow2.f32 %v1639_v36  ;;  %3985 = vmatprep.subr.msk.bf16.mxu1 %vm1560_vm3, %v1728_v38  ;;  %v1739_v43 = vsel %vm1560_vm3, %v1728_v38, 0  ;;  %v1736_v48 = vsel %vm1560_vm3, %v1726_v46, 0 }
 0x4fc   : > { %4335 = vpow2.f32 %v1637_v37 }
 0x4fe   : > { %v1720_v34 = vpop.permute.xlu1 %1719  ;;  %v1893_v52 = vpop.permute.xlu0 %1892 }
 0x4ff   : > { %v1903_v53 = vsel %vm1560_vm3, %v1893_v52, 0 }
 0x502   : > { %v1895_v47 = vpop.permute.xlu1 %1894  ;;  %v1891_v55 = vpop.permute.xlu0 %1890 }
 0x503   : > { %v1906_v50 = vsel %vm1560_vm3, %v1895_v47, 0 }
 0x504   : > { %v5473_v33 = vpop.eup %4331 }
 0x506   : > { %v1722_v49 = vpop.permute.xlu1 %1721 }
 0x508   : > { %v5475_v39 = vpop.eup %4333 }
 0x509   : > { %v5477_v40 = vpop.eup %4335  ;;  %v1651_v41 = vpack.c.bf16 %v5475_v39, %v5475_v39 }
 0x50a   : > { %v1650_v42 = vpack.c.bf16 %v5477_v40, %v5473_v33  ;;  %v1889_v51 = vpop.permute.xlu1 %1888 }
 0x50c   : > { %3911 = vmatprep.mubr.msk.bf16.mxu1 %vm1621_vm4, %v1650_v42 }
 0x50d   : > { %3912 = vmatmul.mubr.msk.bf16.vlgmr.msra.gmra.mxu1 %vm1621_vm4, %v1651_v41 }
 0x50e   : > { %3916 = vmatpush3.bf16.xpose.msra.mxu1 %v1739_v43  ;;  %3919 = vmatprep.mubr.msk.bf16.mxu1 %vm1560_vm3, %v1720_v34 }
 0x50f   : > { %3986 = vmatprep.subr.msk.bf16.mxu1 %vm1560_vm3, %v1726_v46 }
 0x516   : > { %3918 = vmatpush3.bf16.xpose.msra.mxu1 %v1736_v48 }
 0x517   : > { %3987 = vmatprep.subr.msk.bf16.mxu1 %vm1560_vm3, %v1895_v47 }
 0x51d   : > { %3920 = vmatmul.mubr.msk.bf16.vlgmr.msra.gmra.mxu1 %vm1560_vm3, %v1722_v49 }
 0x51e   : > { %3932 = vmatpush3.bf16.xpose.msra.mxu1 %v1906_v50  ;;  %3935 = vmatprep.mubr.msk.bf16.mxu1 %vm1560_vm3, %v1889_v51 }
 0x51f   : > { %3988 = vmatprep.subr.msk.bf16.mxu1 %vm1560_vm3, %v1893_v52 }
 0x526   : > { %3934 = vmatpush3.bf16.xpose.msra.mxu1 %v1903_v53 }
 0x52d   : > { %3936 = vmatmul.mubr.msk.bf16.vlgmr.msra.gmra.mxu1 %vm1560_vm3, %v1891_v55 }
 0x5cd   : > { %v5496_v56 = vpop.f32.mrf.mxu1 }
 0x5cf   : > { %v5498_v57 = vpop.f32.mrf.mxu1 }
 0x5d1   : > { %v3914_v58 = vpop.f32.mrf.mxu1 }
 0x5d3   : > { %v5500_v63 = vpop.f32.mrf.mxu1 }
 0x5dd   : > { %v5502_v0 = vpop.f32.mrf.mxu1 }
 0x5df   : > { %v5504_v1 = vpop.f32.mrf.mxu1 }
 0x5e0   : > { %v1789_v13 = vsel %vm1621_vm4, %v5504_v1, -inf }
 0x5e1   : > { %v3922_v2 = vpop.f32.mrf.mxu1 }
 0x5e3   : > { %v5506_v3 = vpop.f32.mrf.mxu1 }
 0x5e4   : > { %v1792_v15 = vsel %vm1621_vm4, %v5506_v3, -inf }
 0x5ed   : > { %v3937_v4 = vpop.f32.mrf.mxu1 }
 0x5ee   : > { %v1962_v5 = vsel %vm1628_vm5, %v3937_v4, -inf }
 0x5ef   : > { %1963 = vmax.xlane.f32.xlu0 %v1962_v5  ;;  %v1942_v6 = vpop.f32.mrf.mxu1 }
 0x5f0   : > { %v1956_v7 = vsel %vm1621_vm4, %v1942_v6, -inf }
 0x5f1   : > { %1957 = vmax.xlane.f32.xlu1 %v1956_v7  ;;  %v3938_v8 = vpop.f32.mrf.mxu1 }
 0x5f3   : > { %v1945_v9 = vpop.f32.mrf.mxu1 }
 0x5f4   : > { %v1959_v10 = vsel %vm1621_vm4, %v1945_v9, -inf }
 0x5f5   : > { %1960 = vmax.xlane.f32.xlu0 %v1959_v10 }
 0x602   : > { %1985 = vrot.lane.b32.xlu1 %v5435_v12, %s4846_s26 }
 0x606   : > { %2059 = vrot.lane.b32.xlu1 %v5433_v11, %s4847_s10  ;;  %v1795_v11 = vsel %vm1628_vm5, %v5502_v0, -inf }
 0x60a   : > { %2057 = vrot.lane.b32.xlu1 %v5437_v14, %s4847_s10 }
 0x60b   : > { %1987 = vrot.lane.b32.xlu0 %v5425_v62, %s4846_s26 }
 0x60e   : > { %2055 = vrot.lane.b32.xlu1 %v5449_v18, %s4847_s10 }
 0x60f   : > { %2053 = vrot.lane.b32.xlu0 %v5423_v60, %s4847_s10 }
 0x62e   : > { %1790 = vmax.xlane.f32.xlu0 %v1789_v13 }
 0x632   : > { %1793 = vmax.xlane.f32.xlu1 %v1792_v15  ;;  %1796 = vmax.xlane.f32.xlu0 %v1795_v11 }
 0x678   : > { %v1964_v14 = vpop.xlane.xlu0 %1963 }
 0x679   : > { %v1967_v16 = vsub.f32 %v3937_v4, %v1964_v14 }
 0x67a   : > { %v1958_v17 = vpop.xlane.xlu1 %1957 }
 0x67b   : > { %v1965_v19 = vsub.f32 %v1942_v6, %v1958_v17  ;;  %v1972_v18 = vmul.f32 1.442695, %v1967_v16 }
 0x67d   : > { %v1968_v20 = vmul.f32 1.442695, %v1965_v19  ;;  %4337 = vpow2.f32 %v1972_v18 }
 0x67e   : > { %v1961_v21 = vpop.xlane.xlu0 %1960  ;;  %v1986_v25 = vpop.permute.xlu1 %1985 }
 0x67f   : > { %v1966_v60 = vsub.f32 %v1945_v9, %v1961_v21  ;;  %4339 = vpow2.f32 %v1968_v20 }
 0x681   : > { %v1970_v22 = vmul.f32 1.442695, %v1966_v60 }
 0x682   : > { %v1988_v23 = vpop.permute.xlu0 %1987  ;;  %v2060_v26 = vpop.permute.xlu1 %2059 }
 0x683   : > { %4341 = vpow2.f32 %v1970_v22  ;;  %v1997_v24 = vand.u32 %v1988_v23, %v5421_v59  ;;  %v2071_v32 = vsel %vm1560_vm3, %v2060_v26, 0 }
 0x685   : > { %3939 = vmatprep.subr.bf16.mxu1 %v1997_v24 }
 0x686   : > { %3940 = vmatpush3.bf16.msra.mxu1 %v1997_v24  ;;  %v2054_v36 = vpop.permute.xlu0 %2053  ;;  %v2058_v37 = vpop.permute.xlu1 %2057 }
 0x687   : > { %3941 = vmatprep.subr.bf16.mxu1 %v1986_v25  ;;  %v2068_v38 = vsel %vm1560_vm3, %v2058_v37, 0 }
 0x68a   : > { %3942 = vmatpush3.bf16.msra.mxu1 %v1986_v25  ;;  %v4338_v27 = vpop.eup %4337  ;;  %v2056_v41 = vpop.permute.xlu1 %2055 }
 0x68b   : > { %3989 = vmatprep.subr.msk.bf16.mxu1 %vm1560_vm3, %v2060_v26  ;;  %v1984_v31 = vpack.c.bf16 %v4338_v27, %v4338_v27 }
 0x68c   : > { %v4340_v28 = vpop.eup %4339 }
 0x690   : > { %v4342_v29 = vpop.eup %4341 }
 0x691   : > { %v1983_v30 = vpack.c.bf16 %v4342_v29, %v4340_v28 }
 0x693   : > { %3943 = vmatprep.mubr.msk.bf16.mxu1 %vm1621_vm4, %v1983_v30 }
 0x694   : > { %3944 = vmatmul.mubr.msk.bf16.vlgmr.msra.gmra.mxu1 %vm1621_vm4, %v1984_v31 }
 0x695   : > { %3948 = vmatpush3.bf16.xpose.msra.mxu1 %v2071_v32  ;;  %3951 = vmatprep.mubr.msk.bf16.mxu1 %vm1560_vm3, %v2054_v36 }
 0x696   : > { %3990 = vmatprep.subr.msk.bf16.mxu1 %vm1560_vm3, %v2058_v37 }
 0x69d   : > { %3950 = vmatpush3.bf16.xpose.msra.mxu1 %v2068_v38 }
 0x6a4   : > { %3952 = vmatmul.mubr.msk.bf16.vlgmr.msra.gmra.mxu1 %vm1560_vm3, %v2056_v41 }
 0x6a5   : > { %2708 = vmatprep.mubr.bf16.mxu1 %v4844_v61 }
 0x6b7   : > { %v1791_v42 = vpop.xlane.xlu0 %1790 }
 0x6b8   : > { %v1798_v34 = vsub.f32 %v5504_v1, %v1791_v42 }
 0x6ba   : > { %v1801_v43 = vmul.f32 1.442695, %v1798_v34  ;;  %v1644_v34 = vsel %vm1621_vm4, %v5477_v40, 0.0 }
 0x6bb   : > { %v1794_v46 = vpop.xlane.xlu1 %1793  ;;  %v1797_v8 = vpop.xlane.xlu0 %1796 }
 0x6bc   : > { %v1799_v47 = vsub.f32 %v5506_v3, %v1794_v46  ;;  %4343 = vpow2.f32 %v1801_v43  ;;  %v1800_v9 = vsub.f32 %v5502_v0, %v1797_v8  ;;  %v1977_v0 = vsel %vm1621_vm4, %v4342_v29, 0.0  ;;  %v4242_v8 = vld [vmem:[%s5288_s15 + $0x10] sm:$0xff]  }
 0x6bd   : > { %v1641_v43 = vsel %vm1621_vm4, %v5473_v33, 0.0  ;;  %v1647_v46 = vsel %vm1628_vm5, %v5475_v39, 0.0 }
 0x6be   : > { %v1803_v48 = vmul.f32 1.442695, %v1799_v47  ;;  %v1805_v10 = vmul.f32 1.442695, %v1800_v9  ;;  %v4237_v47 = vld [vmem:[%s5288_s15 + $0x38] sm:$0xff]  }
 0x6c0   : > { %4345 = vpow2.f32 %v1803_v48  ;;  %v4238_v48 = vld [vmem:[%s5288_s15 + $0x30] sm:$0xff]  }
 0x6c1   : > { %4347 = vpow2.f32 %v1805_v10 }
 0x6c9   : > { %v4344_v49 = vpop.eup %4343 }
 0x6ca   : > { %v1807_v13 = vsel %vm1621_vm4, %v4344_v49, 0.0 }
 0x6cd   : > { %v4346_v50 = vpop.eup %4345 }
 0x6ce   : > { %v1816_v51 = vpack.c.bf16 %v4346_v50, %v4344_v49  ;;  %v4348_v15 = vpop.eup %4347  ;;  %v1810_v11 = vsel %vm1621_vm4, %v4346_v50, 0.0  ;;  %v4239_v49 = vld [vmem:[%s5288_s15 + $0x28] sm:$0xff]  }
 0x6cf   : > { %v1813_v14 = vsel %vm1628_vm5, %v4348_v15, 0.0  ;;  %v1817_v29 = vpack.c.bf16 %v4348_v15, %v4348_v15 }
 0x6d0   : > { %3927 = vmatprep.mubr.msk.bf16.mxu0 %vm1621_vm4, %v1816_v51 }
 0x754   : > { %v5542_v52 = vpop.f32.mrf.mxu1 }
 0x756   : > { %v5544_v53 = vpop.f32.mrf.mxu1 }
 0x758   : > { %v3946_v55 = vpop.f32.mrf.mxu1 }
 0x75a   : > { %v5546_v58 = vpop.f32.mrf.mxu1 }
 0x764   : > { %v3953_v1 = vpop.f32.mrf.mxu1 }
 0x765   : > { %v2127_v2 = vsel %vm1628_vm5, %v3953_v1, -inf }
 0x766   : > { %2128 = vmax.xlane.f32.xlu1 %v2127_v2  ;;  %v2107_v3 = vpop.f32.mrf.mxu1  ;;  %v4240_v2 = vld [vmem:[%s5288_s15 + $0x20] sm:$0xff]  }
 0x767   : > { %v2121_v4 = vsel %vm1621_vm4, %v2107_v3, -inf }
 0x768   : > { %2122 = vmax.xlane.f32.xlu0 %v2121_v4  ;;  %v3954_v5 = vpop.f32.mrf.mxu1 }
 0x76a   : > { %v2110_v6 = vpop.f32.mrf.mxu1 }
 0x76b   : > { %v2124_v7 = vsel %vm1621_vm4, %v2110_v6, -inf }
 0x76c   : > { %2125 = vmax.xlane.f32.xlu0 %v2124_v7 }
 0x777   : > { %1820 = vrot.lane.b32.xlu1 %v5435_v12, %s4845_s12 }
 0x77b   : > { %2152 = vrot.lane.b32.xlu1 %v5425_v62, %s4847_s10 }
 0x77f   : > { %2150 = vrot.lane.b32.xlu1 %v5435_v12, %s4847_s10  ;;  %v1980_v12 = vsel %vm1628_vm5, %v4338_v27, 0.0 }
 0x782   : > { %1822 = vrot.lane.b32.xlu0 %v5425_v62, %s4845_s12  ;;  %v1974_v62 = vsel %vm1621_vm4, %v4340_v28, 0.0 }
 0x7a1   : > { %1808 = vadd.xlane.f32.xlu0 %v1807_v13 }
 0x7a3   : > { %1811 = vadd.xlane.f32.xlu1 %v1810_v11 }
 0x7a5   : > { %1814 = vadd.xlane.f32.xlu0 %v1813_v14 }
 0x7a7   : > { %1981 = vadd.xlane.f32.xlu1 %v1980_v12  ;;  %v4243_v12 = vld [vmem:[%s5288_s15 + $0x8] sm:$0xff]  }
 0x7a9   : > { %1975 = vadd.xlane.f32.xlu0 %v1974_v62 }
 0x7ad   : > { %1978 = vadd.xlane.f32.xlu0 %v1977_v0 }
 0x7ef   : > { %v2129_v16 = vpop.xlane.xlu1 %2128 }
 0x7f0   : > { %v2132_v17 = vsub.f32 %v3953_v1, %v2129_v16 }
 0x7f1   : > { %v2123_v19 = vpop.xlane.xlu0 %2122 }
 0x7f2   : > { %v2130_v18 = vsub.f32 %v2107_v3, %v2123_v19  ;;  %v2137_v20 = vmul.f32 1.442695, %v2132_v17  ;;  %v4241_v3 = vld [vmem:[%s5288_s15 + $0x18] sm:$0xff]  }
 0x7f3   : > { %v1821_v23 = vpop.permute.xlu1 %1820 }
 0x7f4   : > { %v2133_v21 = vmul.f32 1.442695, %v2130_v18 }
 0x7f5   : > { %v2126_v60 = vpop.xlane.xlu0 %2125 }
 0x7f6   : > { %4349 = vpow2.f32 %v2133_v21  ;;  %v2131_v22 = vsub.f32 %v2110_v6, %v2126_v60  ;;  %v4244_v21 = vld [vmem:[%s5288_s15] sm:$0xff]  }
 0x7f7   : > { %4351 = vpow2.f32 %v2137_v20  ;;  %v2153_v27 = vpop.permute.xlu1 %2152 }
 0x7f8   : > { %v2135_v24 = vmul.f32 1.442695, %v2131_v22  ;;  %v2162_v28 = vand.u32 %v2153_v27, %v5421_v59 }
 0x7f9   : > { %v1823_v25 = vpop.permute.xlu0 %1822 }
 0x7fa   : > { %4353 = vpow2.f32 %v2135_v24  ;;  %v1832_v26 = vand.u32 %v1823_v25, %v5421_v59 }
 0x7fb   : > { %v2151_v36 = vpop.permute.xlu1 %2150 }
 0x7fc   : > { %3923 = vmatprep.subr.bf16.mxu0 %v1832_v26 }
 0x7fd   : > { %3924 = vmatpush3.bf16.msra.mxu0 %v1832_v26 }
 0x7fe   : > { %3925 = vmatprep.subr.bf16.mxu0 %v1821_v23 }
 0x801   : > { %3926 = vmatpush3.bf16.msra.mxu0 %v1821_v23 }
 0x802   : > { %3955 = vmatprep.subr.bf16.mxu0 %v2162_v28 }
 0x803   : > { %v4350_v30 = vpop.eup %4349 }
 0x804   : > { %3928 = vmatmul.mubr.msk.bf16.vlgmr.msra.gmra.mxu0 %vm1621_vm4, %v1817_v29  ;;  %v2139_v31 = vsel %vm1621_vm4, %v4350_v30, 0.0  ;;  %v4352_v32 = vpop.eup %4351 }
 0x805   : > { %2140 = vadd.xlane.f32.xlu0 %v2139_v31  ;;  %3956 = vmatpush3.bf16.msra.mxu0 %v2162_v28  ;;  %v2145_v38 = vsel %vm1628_vm5, %v4352_v32, 0.0  ;;  %v2149_v42 = vpack.c.bf16 %v4352_v32, %v4352_v32 }
 0x806   : > { %3957 = vmatprep.subr.bf16.mxu0 %v2151_v36 }
 0x807   : > { %v4354_v37 = vpop.eup %4353 }
 0x808   : > { %v2142_v59 = vsel %vm1621_vm4, %v4354_v37, 0.0  ;;  %v2148_v41 = vpack.c.bf16 %v4354_v37, %v4350_v30 }
 0x809   : > { %2146 = vadd.xlane.f32.xlu0 %v2145_v38  ;;  %2143 = vadd.xlane.f32.xlu1 %v2142_v59 }
 0x80a   : > { %3958 = vmatpush3.bf16.msra.mxu0 %v2151_v36  ;;  %3959 = vmatprep.mubr.msk.bf16.mxu0 %vm1621_vm4, %v2148_v41 }
 0x80b   : > { %3963 = vmatprep.subr.bf16.mxu0 %v4237_v47 }
 0x80d   : > { %3960 = vmatmul.mubr.msk.bf16.vlgmr.msra.gmra.mxu0 %vm1621_vm4, %v2149_v42  ;;  %1645 = vadd.xlane.f32.xlu0 %v1644_v34 }
 0x80e   : > { %1642 = vadd.xlane.f32.xlu1 %v1641_v43  ;;  %3964 = vmatpush3.bf16.msra.mxu0 %v4237_v47 }
 0x80f   : > { %3965 = vmatprep.subr.bf16.mxu0 %v4238_v48 }
 0x812   : > { %1648 = vadd.xlane.f32.xlu1 %v1647_v46  ;;  %3966 = vmatpush3.bf16.msra.mxu0 %v4238_v48 }
 0x813   : > { %3967 = vmatprep.subr.bf16.mxu0 %v4239_v49 }
 0x816   : > { %3968 = vmatpush3.bf16.msra.mxu0 %v4239_v49 }
 0x817   : > { %3969 = vmatprep.subr.bf16.mxu0 %v4240_v2 }
 0x81a   : > { %3970 = vmatpush3.bf16.msra.mxu0 %v4240_v2 }
 0x81b   : > { %3971 = vmatprep.subr.bf16.mxu0 %v4241_v3 }
 0x81e   : > { %3972 = vmatpush3.bf16.msra.mxu0 %v4241_v3 }
 0x81f   : > { %3973 = vmatprep.subr.bf16.mxu0 %v4242_v8 }
 0x822   : > { %3974 = vmatpush3.bf16.msra.mxu0 %v4242_v8 }
 0x823   : > { %3975 = vmatprep.subr.bf16.mxu0 %v4243_v12 }
 0x826   : > { %3976 = vmatpush3.bf16.msra.mxu0 %v4243_v12 }
 0x827   : > { %3977 = vmatprep.subr.bf16.mxu0 %v4244_v21 }
 0x82a   : > { %v1809_v40 = vpop.xlane.xlu0 %1808  ;;  %3978 = vmatpush3.bf16.msra.mxu0 %v4244_v21  ;;  %v4410_v21 = vld [vmem:[#allocation2 + $0x8] sm:$0x1] }
 0x82c   : > { %v1812_v55 = vpop.xlane.xlu1 %1811 }
 0x82e   : > { %v1815_v50 = vpop.xlane.xlu0 %1814 }
 0x830   : > { %v1982_v39 = vpop.xlane.xlu1 %1981 }
 0x832   : > { %v1976_v51 = vpop.xlane.xlu0 %1975 }
 0x836   : > { %v1979_v33 = vpop.xlane.xlu0 %1978 }
 0x837   : > { %4355 = vrcp.f32 %v1979_v33 }
 0x838   : > { %4357 = vrcp.f32 %v1815_v50 }
 0x839   : > { %4359 = vrcp.f32 %v1976_v51 }
 0x83a   : > { %4361 = vrcp.f32 %v1809_v40 }
 0x83b   : > { %4363 = vrcp.f32 %v1812_v55 }
 0x83c   : > { %4365 = vrcp.f32 %v1982_v39 }
 0x844   : > { %v4356_v5 = vpop.eup %4355 }
 0x845   : > { %v4358_v6 = vpop.eup %4357  ;;  %v2051_v15 = vmul.f32 %v4356_v5, %v5546_v58 }
 0x846   : > { %v4360_v9 = vpop.eup %4359 }
 0x847   : > { %v2050_v14 = vmul.f32 %v4360_v9, %v5544_v53  ;;  %v4362_v62 = vpop.eup %4361 }
 0x848   : > { %v4364_v16 = vpop.eup %4363 }
 0x849   : > { %v4195_v17 = vpack.i.bf16 %v2051_v15, %v2050_v14  ;;  %v4366_v19 = vpop.eup %4365  ;;  %v3695_v14 = vld [vmem:[%s6021_s20] ss:$0 sm:$0xff] }
 0x84a   : > { %v2052_v23 = vmul.f32 %v4366_v19, %v5542_v52 }
 0x88e   : > { %v2141_v1 = vpop.xlane.xlu0 %2140 }
 0x892   : > { %v2147_v4 = vpop.xlane.xlu0 %2146  ;;  %v2144_v7 = vpop.xlane.xlu1 %2143 }
 0x893   : > { %4367 = vrcp.f32 %v2147_v4 }
 0x894   : > { %4369 = vrcp.f32 %v2141_v1 }
 0x895   : > { %4371 = vrcp.f32 %v2144_v7 }
 0x896   : > { %v1646_v36 = vpop.xlane.xlu0 %1645 }
 0x897   : > { %v1643_v52 = vpop.xlane.xlu1 %1642  ;;  %4373 = vrcp.f32 %v1646_v36  ;;  %v4256_v36 = vld [vmem:[%s5296_s3 + $0xcc] ss:$16 sps:$4 sm:$0xff]  }
 0x898   : > { %4375 = vrcp.f32 %v1643_v52  ;;  %v4253_v52 = vld [vmem:[%s5296_s3 + $0xc4] ss:$16 sps:$4 sm:$0xff]  }
 0x89b   : > { %v1649_v37 = vpop.xlane.xlu1 %1648 }
 0x89c   : > { %4377 = vrcp.f32 %v1649_v37  ;;  %v4251_v37 = vld [vmem:[%s5296_s3 + $0xc0] ss:$16 sps:$4 sm:$0xff]  }
 0x8a0   : > { %v4368_v24 = vpop.eup %4367 }
 0x8a1   : > { %v4370_v27 = vpop.eup %4369 }
 0x8a2   : > { %v4372_v28 = vpop.eup %4371 }
 0x8a4   : > { %v4374_v42 = vpop.eup %4373 }
 0x8a5   : > { %v4376_v43 = vpop.eup %4375  ;;  %v1715_v40 = vmul.f32 %v4374_v42, %v5500_v63  ;;  %v4257_v42 = vld [vmem:[%s5296_s3 + $0xa0] ss:$16 sps:$4 sm:$0xff]  }
 0x8a6   : > { %v1714_v49 = vmul.f32 %v4376_v43, %v5498_v57  ;;  %v4265_v43 = vld [vmem:[%s5296_s3 + $0x84] ss:$16 sps:$4 sm:$0xff]  }
 0x8a9   : > { %v4378_v46 = vpop.eup %4377 }
 0x8aa   : > { %v1716_v50 = vmul.f32 %v4378_v46, %v5496_v56  ;;  %v4268_v46 = vld [vmem:[%s5296_s3 + $0x8c] ss:$16 sps:$4 sm:$0xff]  }
 0x8c4   : > { %v3929_v10 = vpop.f32.mrf.mxu0 }
 0x8c5   : > { %v1887_v13 = vmul.f32 %v4358_v6, %v3929_v10 }
 0x8c6   : > { %v1868_v11 = vpop.f32.mrf.mxu0 }
 0x8c7   : > { %2225 = vrot.lane.b32.xlu1 %v1887_v13, %s4847_s10  ;;  %v1885_v20 = vmul.f32 %v4362_v62, %v1868_v11  ;;  %v3686_v13 = vld [vmem:[%s6019_s13] ss:$0 sm:$0xff] }
 0x8c8   : > { %v3930_v0 = vpop.f32.mrf.mxu0 }
 0x8ca   : > { %v1871_v18 = vpop.f32.mrf.mxu0 }
 0x8cb   : > { %v1886_v58 = vmul.f32 %v4364_v16, %v1871_v18  ;;  %4196 = vrot.lane.b32.xlu1 %v4195_v17, %s4846_s26  ;;  %v4409_v18 = vld [vmem:[#allocation2 + $0x10] sm:$0xff] }
 0x8cd   : > { %v4190_v60 = vpack.i.bf16 %v1886_v58, %v1885_v20  ;;  %v3961_v22 = vpop.f32.mrf.mxu0 }
 0x8ce   : > { %v2217_v25 = vmul.f32 %v4368_v24, %v3961_v22 }
 0x8cf   : > { %v2198_v53 = vpop.f32.mrf.mxu0  ;;  %4191 = vrot.lane.b32.xlu0 %v4190_v60, %s4847_s10  ;;  %2237 = vrot.lane.b32.xlu1 %v2052_v23, %s4846_s26  ;;  %v4411_v23 = vld [vmem:[#allocation2] sm:$0xff] }
 0x8d0   : > { %v2215_v30 = vmul.f32 %v4370_v27, %v2198_v53 }
 0x8d1   : > { %v3962_v26 = vpop.f32.mrf.mxu0 }
 0x8d3   : > { %v2201_v29 = vpop.f32.mrf.mxu0  ;;  %2249 = vrot.lane.b32.xlu1 %v2217_v25, %s4845_s12 }
 0x8d4   : > { %v2216_v31 = vmul.f32 %v4372_v28, %v2201_v29  ;;  %v4247_v29 = vld [vmem:[%s5296_s3 + $0xe4] ss:$16 sps:$4 sm:$0xff]  }
 0x8d5   : > { %2676 = vmatprep.subr.bf16.mxu1 %v4247_v29 }
 0x8d6   : > { %v4200_v32 = vpack.i.bf16 %v2216_v31, %v2215_v30  ;;  %v4250_v30 = vld [vmem:[%s5296_s3 + $0xec] ss:$16 sps:$4 sm:$0xff]   ;;  %v4245_v31 = vld [vmem:[%s5296_s3 + $0xe0] ss:$16 sps:$4 sm:$0xff]  }
 0x8d7   : > { %2727 = vmatprep.subr.bf16.mxu0 %v4250_v30  ;;  %2677 = vmatpush1.bf16.msra.mxu1 %v4245_v31 }
 0x8d8   : > { %4201 = vrot.lane.b32.xlu0 %v4200_v32, %s4845_s12  ;;  %v4248_v32 = vld [vmem:[%s5296_s3 + $0xe8] ss:$16 sps:$4 sm:$0xff]   ;;  %2678 = vmatprep.subr.bf16.mxu1 %v4253_v52 }
 0x8db   : > { %2679 = vmatpush1.bf16.msra.mxu1 %v4251_v37 }
 0x939   : > { %v2226_v38 = vpop.permute.xlu1 %2225 }
 0x93a   : > { %v2256_v39 = vsel %vm1560_vm3, %v1716_v50, %v2226_v38  ;;  %v4254_v38 = vld [vmem:[%s5296_s3 + $0xc8] ss:$16 sps:$4 sm:$0xff]   ;;  %v4269_v50 = vld [vmem:[%s5296_s3 + $0x60] ss:$16 sps:$4 sm:$0xff]  }
 0x93d   : > { %v4197_v59 = vpop.permute.xlu1 %4196 }
 0x93e   : > { %v4199_v1 = vunpack.i.h.bf16 %v4197_v59  ;;  %v4198_v2 = vunpack.i.l.bf16 %v4197_v59  ;;  %v4259_v59 = vld [vmem:[%s5296_s3 + $0xa4] ss:$16 sps:$4 sm:$0xff]  }
 0x93f   : > { %2680 = vmatprep.subr.bf16.mxu1 %v4259_v59 }
 0x940   : > { %2681 = vmatpush1.bf16.msra.mxu1 %v4257_v42 }
 0x941   : > { %v4192_v41 = vpop.permute.xlu0 %4191  ;;  %v2238_v34 = vpop.permute.xlu1 %2237  ;;  %2682 = vmatprep.subr.bf16.mxu1 %v4265_v43 }
 0x942   : > { %v4194_v47 = vunpack.i.h.bf16 %v4192_v41  ;;  %v4193_v48 = vunpack.i.l.bf16 %v4192_v41  ;;  %v2260_v4 = vsel %vm2257_vm6, %v2256_v39, %v2238_v34  ;;  %v4262_v41 = vld [vmem:[%s5296_s3 + $0xac] ss:$16 sps:$4 sm:$0xff]   ;;  %v4260_v34 = vld [vmem:[%s5296_s3 + $0xa8] ss:$16 sps:$4 sm:$0xff]   ;;  %v4275_v39 = vld [vmem:[%s5296_s3 + $0x40] ss:$16 sps:$4 sm:$0xff]  }
 0x944   : > { %v2255_v51 = vsel %vm1560_vm3, %v1715_v40, %v4194_v47  ;;  %v2254_v33 = vsel %vm1560_vm3, %v1714_v49, %v4193_v48  ;;  %v4263_v47 = vld [vmem:[%s5296_s3 + $0x80] ss:$16 sps:$4 sm:$0xff]   ;;  %v4266_v48 = vld [vmem:[%s5296_s3 + $0x88] ss:$16 sps:$4 sm:$0xff]   ;;  %v4271_v49 = vld [vmem:[%s5296_s3 + $0x64] ss:$16 sps:$4 sm:$0xff]  }
 0x945   : > { %v2250_v55 = vpop.permute.xlu1 %2249  ;;  %v2258_v6 = vsel %vm2257_vm6, %v2254_v33, %v4198_v2  ;;  %v2259_v56 = vsel %vm2257_vm6, %v2255_v51, %v4199_v1  ;;  %2683 = vmatpush1.bf16.msra.mxu1 %v4263_v47  ;;  %v4274_v40 = vld [vmem:[%s5296_s3 + $0x6c] ss:$16 sps:$4 sm:$0xff]   ;;  %v4272_v51 = vld [vmem:[%s5296_s3 + $0x68] ss:$16 sps:$4 sm:$0xff]   ;;  %v4277_v33 = vld [vmem:[%s5296_s3 + $0x44] ss:$16 sps:$4 sm:$0xff]  }
 0x946   : > { %v2264_v63 = vsel %vm2261_vm7, %v2260_v4, %v2250_v55  ;;  %2684 = vmatprep.subr.bf16.mxu1 %v4271_v49  ;;  %v4280_v55 = vld [vmem:[%s5296_s3 + $0x4c] ss:$16 sps:$4 sm:$0xff]   ;;  %v4278_v1 = vld [vmem:[%s5296_s3 + $0x48] ss:$16 sps:$4 sm:$0xff]   ;;  %v4283_v2 = vld [vmem:[%s5296_s3 + $0x24] ss:$16 sps:$4 sm:$0xff]  }
 0x947   : > { %v2266_v10 = vpack.c.bf16 %v2264_v63, %v2264_v63  ;;  %v4281_v4 = vld [vmem:[%s5296_s3 + $0x20] ss:$16 sps:$4 sm:$0xff]   ;;  %v4292_v63 = vld [vmem:[%s5296_s3 + $0xc] ss:$16 sps:$4 sm:$0xff]  }
 0x948   : > { %v4293_v49 = vld [vmem:[%s5349_s14 + $0x78] sm:$0xff]  }
 0x949   : > { %2685 = vmatpush1.bf16.msra.mxu1 %v4269_v50  ;;  %v4295_v50 = vld [vmem:[%s5349_s14 + $0x38] sm:$0xff]  }
 0x94a   : > { %v4202_v3 = vpop.permute.xlu0 %4201  ;;  %2686 = vmatprep.subr.bf16.mxu1 %v4277_v33  ;;  %v4297_v33 = vld [vmem:[%s5349_s14 + $0x70] sm:$0xff]  }
 0x94b   : > { %v4204_v57 = vunpack.i.h.bf16 %v4202_v3  ;;  %v4203_v5 = vunpack.i.l.bf16 %v4202_v3  ;;  %v4286_v3 = vld [vmem:[%s5296_s3 + $0x2c] ss:$16 sps:$4 sm:$0xff]  }
 0x94d   : > { %v2262_v7 = vsel %vm2261_vm7, %v2258_v6, %v4203_v5  ;;  %v2263_v8 = vsel %vm2261_vm7, %v2259_v56, %v4204_v57  ;;  %2687 = vmatpush1.bf16.msra.mxu1 %v4275_v39  ;;  %v4284_v57 = vld [vmem:[%s5296_s3 + $0x28] ss:$16 sps:$4 sm:$0xff]   ;;  %v4289_v5 = vld [vmem:[%s5296_s3 + $0x4] ss:$16 sps:$4 sm:$0xff]   ;;  %v4287_v6 = vld [vmem:[%s5296_s3] ss:$16 sps:$4 sm:$0xff]  }
 0x94e   : > { %v2265_v9 = vpack.c.bf16 %v2263_v8, %v2262_v7  ;;  %2688 = vmatprep.subr.bf16.mxu1 %v4283_v2  ;;  %v4290_v56 = vld [vmem:[%s5296_s3 + $0x8] ss:$16 sps:$4 sm:$0xff]   ;;  %s6022_s3 = scalar_lea.vmem [#allocation16], %s5277_s9  ;;  %v4300_v39 = vld [vmem:[%s5349_s14 + $0xb0] sm:$0xff]  }
 0x94f   : > { %v3696_v29 = vld [vmem:[%s6022_s3] ss:$0 sm:$0xff] }
 0x950   : > { %3979 = vmatprep.mubr.bf16.mxu0 %v2265_v9  ;;  %v4302_v2 = vld [vmem:[%s5349_s14 + $0xe8] sm:$0xff]  }
 0x951   : > { %3980 = vmatmul.mubr.bf16.vlgmr.msra.gmra.mxu0 %v2266_v10  ;;  %2689 = vmatpush1.bf16.msra.mxu1 %v4281_v4  ;;  %v4304_v4 = vld [vmem:[%s5349_s14 + $0xa8] sm:$0xff]  }
 0x952   : > { %2759 = vmatprep.mubr.bf16.mxu0 %v4844_v61  ;;  %2728 = vmatpush1.bf16.msra.mxu0 %v4248_v32 }
 0x953   : > { %2729 = vmatprep.subr.bf16.mxu0 %v4256_v36  ;;  %2690 = vmatprep.subr.bf16.mxu1 %v4289_v5  ;;  %v3697_v36 = vld [vmem:[%s1010_s22] ss:$0 sm:$0xff]  ;;  %v4306_v5 = vld [vmem:[%s5349_s14 + $0xe0] sm:$0xff]  }
 0x955   : > { %2691 = vmatpush1.bf16.msra.mxu1 %v4287_v6  ;;  %v4308_v6 = vld [vmem:[%s5349_s14 + $0xa0] sm:$0xff]  }
 0x956   : > { %2730 = vmatpush1.bf16.msra.mxu0 %v4254_v38  ;;  %3823 = vmatprep.subr.bf16.mxu1 %v4293_v49 }
 0x957   : > { %2731 = vmatprep.subr.bf16.mxu0 %v4262_v41 }
 0x95a   : > { %2732 = vmatpush1.bf16.msra.mxu0 %v4260_v34 }
 0x95b   : > { %2733 = vmatprep.subr.bf16.mxu0 %v4268_v46 }
 0x95e   : > { %2734 = vmatpush1.bf16.msra.mxu0 %v4266_v48 }
 0x95f   : > { %2735 = vmatprep.subr.bf16.mxu0 %v4274_v40  ;;  %v4294_v40 = vld [vmem:[%s5349_s14 + $0xf8] sm:$0xff]  }
 0x962   : > { %2736 = vmatpush1.bf16.msra.mxu0 %v4272_v51  ;;  %v4296_v51 = vld [vmem:[%s5349_s14 + $0xb8] sm:$0xff]  }
 0x963   : > { %2737 = vmatprep.subr.bf16.mxu0 %v4280_v55  ;;  %v4299_v55 = vld [vmem:[%s5349_s14 + $0x30] sm:$0xff]  }
 0x966   : > { %2738 = vmatpush1.bf16.msra.mxu0 %v4278_v1  ;;  %v4301_v1 = vld [vmem:[%s5349_s14 + $0x68] sm:$0xff]  }
 0x967   : > { %2739 = vmatprep.subr.bf16.mxu0 %v4286_v3  ;;  %v4303_v3 = vld [vmem:[%s5349_s14 + $0x28] sm:$0xff]  }
 0x96a   : > { %2740 = vmatpush1.bf16.msra.mxu0 %v4284_v57  ;;  %v4305_v57 = vld [vmem:[%s5349_s14 + $0x60] sm:$0xff]  }
 0x96b   : > { %2741 = vmatprep.subr.bf16.mxu0 %v4292_v63  ;;  %v4307_v63 = vld [vmem:[%s5349_s14 + $0x20] sm:$0xff]  }
 0x96e   : > { %2742 = vmatpush1.bf16.msra.mxu0 %v4290_v56  ;;  %v4309_v56 = vld [vmem:[%s5349_s14 + $0x58] sm:$0xff]  }
 0x96f   : > { %3851 = vmatprep.subr.bf16.mxu0 %v4294_v40 }
 0xa11   : > { %v3981_v15 = vpop.f32.mrf.mxu0 }
 0xa12   : > { %v2381_v11 = vadd.f32 %v3981_v15, %v3686_v13 }
 0xa13   : > { %v2372_v12 = vpop.f32.mrf.mxu0 }
 0xa14   : > { %v2373_v62 = vadd.f32 %v3686_v13, %v2372_v12  ;;  %v2395_v0 = vmul.f32 %v3695_v14, %v2381_v11 }
 0xa15   : > { %v3982_v16 = vpop.f32.mrf.mxu0 }
 0xa16   : > { %v2393_v17 = vmul.f32 %v3695_v14, %v2373_v62  ;;  %v5616_v60 = vadd.f32 %v4410_v21, %v2395_v0 }
 0xa17   : > { %v2375_v19 = vpop.f32.mrf.mxu0 }
 0xa18   : > { %v5614_v20 = vadd.f32 %v4409_v18, %v2393_v17  ;;  %v2376_v58 = vadd.f32 %v3686_v13, %v2375_v19  ;;  %v2413_v25 = vmul.f32 %v5616_v60, %v5616_v60  ;;  %v2405_v28 = vsel %vm1219_vm2, %v5616_v60, 0.0 }
 0xa1a   : > { %v2394_v22 = vmul.f32 %v3695_v14, %v2376_v58  ;;  %2401 = vadd.xlane.f32.xlu0 %v5614_v20  ;;  %v2411_v24 = vmul.f32 %v5614_v20, %v5614_v20  ;;  %v2418_v27 = vsel %vm1219_vm2, %v2413_v25, 0.0 }
 0xa1c   : > { %v5619_v53 = vadd.f32 %v4411_v23, %v2394_v22 }
 0xa1e   : > { %2403 = vadd.xlane.f32.xlu1 %v5619_v53  ;;  %2414 = vadd.xlane.f32.xlu0 %v2411_v24  ;;  %v2412_v26 = vmul.f32 %v5619_v53, %v5619_v53 }
 0xa22   : > { %2419 = vadd.xlane.f32.xlu1 %v2418_v27  ;;  %2416 = vadd.xlane.f32.xlu0 %v2412_v26 }
 0xa26   : > { %2406 = vadd.xlane.f32.xlu0 %v2405_v28 }
 0xaa3   : > { %v2402_v7 = vpop.xlane.xlu0 %2401 }
 0xaa4   : > { %v2408_v8 = vmul.f32 0.0078125, %v2402_v7  ;;  %v4310_v7 = vld [vmem:[%s5349_s14 + $0xd8] sm:$0xff]  }
 0xaa6   : > { %v2424_v13 = vmul.f32 %v2408_v8, %v2408_v8  ;;  %v2430_v26 = vsub.f32 %v5614_v20, %v2408_v8  ;;  %v4311_v8 = vld [vmem:[%s5349_s14 + $0x18] sm:$0xff]  }
 0xaa7   : > { %v2404_v9 = vpop.xlane.xlu1 %2403  ;;  %v2415_v10 = vpop.xlane.xlu0 %2414 }
 0xaa8   : > { %v2409_v15 = vmul.f32 0.0078125, %v2404_v9  ;;  %v2421_v11 = vmul.f32 0.0078125, %v2415_v10  ;;  %v4312_v9 = vld [vmem:[%s5349_s14 + $0x98] sm:$0xff]   ;;  %v4313_v10 = vld [vmem:[%s5349_s14 + $0x50] sm:$0xff]  }
 0xaaa   : > { %v2427_v14 = vsub.f32 %v2421_v11, %v2424_v13  ;;  %v2425_v62 = vmul.f32 %v2409_v15, %v2409_v15  ;;  %v2431_v30 = vsub.f32 %v5619_v53, %v2409_v15  ;;  %v4314_v13 = vld [vmem:[%s5349_s14 + $0xd0] sm:$0xff]  }
 0xaab   : > { %v2417_v12 = vpop.xlane.xlu0 %2416  ;;  %v2420_v19 = vpop.xlane.xlu1 %2419  ;;  %v4315_v15 = vld [vmem:[%s5349_s14 + $0x10] sm:$0xff]  }
 0xaac   : > { %v2433_v0 = vadd.f32 1e-06, %v2427_v14  ;;  %v2422_v16 = vmul.f32 0.0078125, %v2417_v12  ;;  %v2423_v22 = vmul.f32 0.0078125, %v2420_v19  ;;  %v4316_v11 = vld [vmem:[%s5349_s14 + $0x90] sm:$0xff]   ;;  %v4317_v14 = vld [vmem:[%s5349_s14 + $0x48] sm:$0xff]  }
 0xaad   : > { %v4318_v12 = vld [vmem:[%s5349_s14 + $0xc8] sm:$0xff]   ;;  %v4323_v19 = vld [vmem:[%s5349_s14] sm:$0xff]  }
 0xaae   : > { %4379 = vrsqrt.f32 %v2433_v0  ;;  %v2428_v17 = vsub.f32 %v2422_v16, %v2425_v62  ;;  %v4319_v62 = vld [vmem:[%s5349_s14 + $0x8] sm:$0xff]   ;;  %v4321_v16 = vld [vmem:[%s5349_s14 + $0x40] sm:$0xff]  }
 0xaaf   : > { %v2407_v18 = vpop.xlane.xlu0 %2406  ;;  %v4320_v0 = vld [vmem:[%s5349_s14 + $0x88] sm:$0xff]  }
 0xab0   : > { %v2434_v58 = vadd.f32 1e-06, %v2428_v17  ;;  %v2410_v21 = vmul.f32 0.0078125, %v2407_v18  ;;  %v4322_v17 = vld [vmem:[%s5349_s14 + $0xc0] sm:$0xff]  }
 0xab1   : > { %v4324_v18 = vld [vmem:[%s5349_s14 + $0x80] sm:$0xff]  }
 0xab2   : > { %4381 = vrsqrt.f32 %v2434_v58  ;;  %v2426_v23 = vmul.f32 %v2410_v21, %v2410_v21  ;;  %v2432_v38 = vsub.f32 %v5616_v60, %v2410_v21  ;;  %v2494_v58 = vld [vmem:[%s5338_s7] sm:$0xf]  ;;  %v2510_v21 = vsub.s32 3, %v5409_v44 }
 0xab4   : > { %v2429_v24 = vsub.f32 %v2423_v22, %v2426_v23  ;;  %v2499_v22 = vrot.slane %v2494_v58, %v1314_v35  ;;  %v5713_v23 = vrot.slane %v2494_v58, %v1322_v45 }
 0xab6   : > { %v2435_v25 = vadd.f32 1e-06, %v2429_v24  ;;  %v5717_v24 = vrot.slane %v2494_v58, %v1318_v54 }
 0xab8   : > { %4383 = vrsqrt.f32 %v2435_v25  ;;  %v5719_v25 = vrot.slane %v2494_v58, %v2510_v21 }
 0xabb   : > { %v4380_v27 = vpop.eup %4379 }
 0xabc   : > { %v2439_v28 = vmul.f32 %v4380_v27, %v2430_v26 }
 0xabe   : > { %v2448_v52 = vmul.f32 %v3696_v29, %v2439_v28 }
 0xabf   : > { %v4382_v31 = vpop.eup %4381 }
 0xac0   : > { %v2440_v32 = vmul.f32 %v4382_v31, %v2431_v30  ;;  %v2457_v59 = vadd.f32 %v3697_v36, %v2448_v52 }
 0xac2   : > { %v2449_v37 = vmul.f32 %v3696_v29, %v2440_v32 }
 0xac4   : > { %v2458_v41 = vadd.f32 %v3697_v36, %v2449_v37 }
 0xac5   : > { %v4384_v42 = vpop.eup %4383 }
 0xac6   : > { %v2441_v34 = vmul.f32 %v4384_v42, %v2432_v38  ;;  %v2460_v43 = vpack.c.bf16 %v2458_v41, %v2457_v59 }
 0xac8   : > { %v2450_v46 = vmul.f32 %v3696_v29, %v2441_v34  ;;  %2709 = vmatmul.mubr.bf16.vlgmr.msra.gmra.mxu1 %v2460_v43  ;;  %2760 = vmatmul.mubr.bf16.vlgmr.msra.gmra.mxu0 %v2460_v43 }
 0xac9   : > { %2718 = vmatprep.mubr.bf16.mxu1 %v4844_v61  ;;  %2769 = vmatprep.mubr.bf16.mxu0 %v4844_v61  ;;  %v4298_v61 = vld [vmem:[%s5349_s14 + $0xf0] sm:$0xff]  }
 0xaca   : > { %v2459_v47 = vadd.f32 %v3697_v36, %v2450_v46  ;;  %3824 = vmatpush3.bf16.msra.mxu1 %v4295_v50  ;;  %3852 = vmatpush3.bf16.msra.mxu0 %v4296_v51 }
 0xacb   : > { %3825 = vmatprep.subr.bf16.mxu1 %v4297_v33  ;;  %3853 = vmatprep.subr.bf16.mxu0 %v4298_v61 }
 0xacc   : > { %v2461_v48 = vpack.c.bf16 %v2459_v47, %v2459_v47 }
 0xace   : > { %3826 = vmatpush3.bf16.msra.mxu1 %v4299_v55  ;;  %3854 = vmatpush3.bf16.msra.mxu0 %v4300_v39 }
 0xacf   : > { %3827 = vmatprep.subr.bf16.mxu1 %v4301_v1  ;;  %3855 = vmatprep.subr.bf16.mxu0 %v4302_v2 }
 0xad0   : > { %2719 = vmatmul.mubr.bf16.gmra.mxu1 %v2461_v48  ;;  %2770 = vmatmul.mubr.bf16.gmra.mxu0 %v2461_v48 }
 0xad2   : > { %3828 = vmatpush3.bf16.msra.mxu1 %v4303_v3  ;;  %3856 = vmatpush3.bf16.msra.mxu0 %v4304_v4 }
 0xad3   : > { %3829 = vmatprep.subr.bf16.mxu1 %v4305_v57  ;;  %3857 = vmatprep.subr.bf16.mxu0 %v4306_v5 }
 0xad6   : > { %3830 = vmatpush3.bf16.msra.mxu1 %v4307_v63  ;;  %3858 = vmatpush3.bf16.msra.mxu0 %v4308_v6 }
 0xad7   : > { %3831 = vmatprep.subr.bf16.mxu1 %v4309_v56  ;;  %3859 = vmatprep.subr.bf16.mxu0 %v4310_v7 }
 0xada   : > { %3832 = vmatpush3.bf16.msra.mxu1 %v4311_v8  ;;  %3860 = vmatpush3.bf16.msra.mxu0 %v4312_v9 }
 0xadb   : > { %3833 = vmatprep.subr.bf16.mxu1 %v4313_v10  ;;  %3861 = vmatprep.subr.bf16.mxu0 %v4314_v13 }
 0xade   : > { %3834 = vmatpush3.bf16.msra.mxu1 %v4315_v15  ;;  %3862 = vmatpush3.bf16.msra.mxu0 %v4316_v11 }
 0xadf   : > { %3835 = vmatprep.subr.bf16.mxu1 %v4317_v14  ;;  %3863 = vmatprep.subr.bf16.mxu0 %v4318_v12 }
 0xae2   : > { %3836 = vmatpush3.bf16.msra.mxu1 %v4319_v62  ;;  %3864 = vmatpush3.bf16.msra.mxu0 %v4320_v0 }
 0xae3   : > { %3837 = vmatprep.subr.bf16.mxu1 %v4321_v16  ;;  %3865 = vmatprep.subr.bf16.mxu0 %v4322_v17 }
 0xae6   : > { %3838 = vmatpush3.bf16.msra.mxu1 %v4323_v19  ;;  %3866 = vmatpush3.bf16.msra.mxu0 %v4324_v18 }
 0xb88   : > { %v2710_v26 = vpop.f32.mrf.mxu1  ;;  %v2761_v27 = vpop.f32.mrf.mxu0 }
 0xb89   : > { %v5721_v28 = vadd.f32 %v2710_v26, %v2499_v22  ;;  %v5724_v29 = vadd.f32 %v2761_v27, %v5713_v23 }
 0xb8a   : > { %v2712_v30 = vpop.f32.mrf.mxu1  ;;  %v2763_v31 = vpop.f32.mrf.mxu0 }
 0xb8b   : > { %v2778_v35 = vmul.f32 %v5721_v28, %v5721_v28  ;;  %v2780_v45 = vmul.f32 %v5724_v29, %v5724_v29  ;;  %v5731_v44 = vadd.f32 %v2712_v30, %v5717_v24  ;;  %v5734_v54 = vadd.f32 %v2763_v31, %v5719_v25 }
 0xb8c   : > { %v2714_v32 = vpop.f32.mrf.mxu1  ;;  %v2765_v52 = vpop.f32.mrf.mxu0 }
 0xb8d   : > { %v2790_v36 = vmul.f32 %v2778_v35, %v5721_v28  ;;  %v2792_v37 = vmul.f32 %v2780_v45, %v5724_v29  ;;  %v2779_v38 = vmul.f32 %v5731_v44, %v5731_v44  ;;  %v2781_v59 = vmul.f32 %v5734_v54, %v5734_v54 }
 0xb8e   : > { %v5742_v41 = vadd.f32 %v2714_v32, %v2499_v22  ;;  %v5745_v42 = vadd.f32 %v2765_v52, %v5713_v23  ;;  %v2716_v34 = vpop.f32.mrf.mxu1  ;;  %v2767_v43 = vpop.f32.mrf.mxu0 }
 0xb8f   : > { %v2802_v46 = vmul.f32 0.044715, %v2790_v36  ;;  %v2804_v47 = vmul.f32 0.044715, %v2792_v37  ;;  %v2791_v48 = vmul.f32 %v2779_v38, %v5731_v44  ;;  %v2793_v49 = vmul.f32 %v2781_v59, %v5734_v54 }
 0xb90   : > { %v2782_v40 = vmul.f32 %v5742_v41, %v5742_v41  ;;  %v2784_v50 = vmul.f32 %v5745_v42, %v5745_v42  ;;  %v5754_v51 = vadd.f32 %v2716_v34, %v5717_v24  ;;  %v5757_v33 = vadd.f32 %v2767_v43, %v5719_v25  ;;  %v2720_v61 = vpop.f32.mrf.mxu1  ;;  %v2771_v55 = vpop.f32.mrf.mxu0 }
 0xb91   : > { %v2814_v39 = vadd.f32 %v2802_v46, %v5721_v28  ;;  %v2816_v1 = vadd.f32 %v2804_v47, %v5724_v29  ;;  %v2803_v2 = vmul.f32 0.044715, %v2791_v48  ;;  %v2805_v3 = vmul.f32 0.044715, %v2793_v49 }
 0xb92   : > { %v2794_v4 = vmul.f32 %v2782_v40, %v5742_v41  ;;  %v2796_v57 = vmul.f32 %v2784_v50, %v5745_v42  ;;  %v2783_v5 = vmul.f32 %v5754_v51, %v5754_v51  ;;  %v2785_v63 = vmul.f32 %v5757_v33, %v5757_v33  ;;  %v2722_v6 = vpop.f32.mrf.mxu1  ;;  %v2773_v56 = vpop.f32.mrf.mxu0 }
 0xb93   : > { %v2826_v7 = vmul.f32 0.7978846, %v2814_v39  ;;  %v2828_v8 = vmul.f32 0.7978846, %v2816_v1  ;;  %v2815_v9 = vadd.f32 %v2803_v2, %v5731_v44  ;;  %v2817_v10 = vadd.f32 %v2805_v3, %v5734_v54 }
 0xb94   : > { %v2806_v13 = vmul.f32 0.044715, %v2794_v4  ;;  %v2808_v15 = vmul.f32 0.044715, %v2796_v57  ;;  %v2795_v11 = vmul.f32 %v2783_v5, %v5754_v51  ;;  %v2797_v14 = vmul.f32 %v2785_v63, %v5757_v33  ;;  %v2724_v12 = vpop.f32.mrf.mxu1  ;;  %v2775_v62 = vpop.f32.mrf.mxu0 }
 0xb95   : > { %4385 = vtanh.f32 %v2826_v7  ;;  %v2827_v0 = vmul.f32 0.7978846, %v2815_v9  ;;  %v2829_v16 = vmul.f32 0.7978846, %v2817_v10  ;;  %v5771_v17 = vadd.f32 %v2720_v61, %v2499_v22 }
 0xb96   : > { %4387 = vtanh.f32 %v2828_v8  ;;  %v2818_v19 = vadd.f32 %v2806_v13, %v5742_v41  ;;  %v2820_v18 = vadd.f32 %v2808_v15, %v5745_v42  ;;  %v2807_v58 = vmul.f32 0.044715, %v2795_v11  ;;  %v2725_v21 = vpop.f32.mrf.mxu1  ;;  %v2776_v26 = vpop.f32.mrf.mxu0 }
 0xb97   : > { %4389 = vtanh.f32 %v2827_v0  ;;  %v2809_v27 = vmul.f32 0.044715, %v2797_v14  ;;  %v2786_v30 = vmul.f32 %v5771_v17, %v5771_v17  ;;  %v5778_v31 = vadd.f32 %v2771_v55, %v5713_v23 }
 0xb98   : > { %4391 = vtanh.f32 %v2829_v16  ;;  %v2830_v35 = vmul.f32 0.7978846, %v2818_v19  ;;  %v2832_v22 = vmul.f32 0.7978846, %v2820_v18  ;;  %v2819_v45 = vadd.f32 %v2807_v58, %v5754_v51 }
 0xb99   : > { %v2821_v32 = vadd.f32 %v2809_v27, %v5757_v33  ;;  %v2798_v52 = vmul.f32 %v2786_v30, %v5771_v17  ;;  %v2788_v36 = vmul.f32 %v5778_v31, %v5778_v31  ;;  %v5786_v37 = vadd.f32 %v2722_v6, %v5717_v24 }
 0xb9a   : > { %4393 = vtanh.f32 %v2830_v35  ;;  %v2831_v38 = vmul.f32 0.7978846, %v2819_v45  ;;  %v5789_v23 = vadd.f32 %v2773_v56, %v5719_v25 }
 0xb9b   : > { %4395 = vtanh.f32 %v2832_v22  ;;  %v2833_v59 = vmul.f32 0.7978846, %v2821_v32  ;;  %v2810_v34 = vmul.f32 0.044715, %v2798_v52  ;;  %v2800_v43 = vmul.f32 %v2788_v36, %v5778_v31 }
 0xb9c   : > { %4397 = vtanh.f32 %v2831_v38  ;;  %v2787_v46 = vmul.f32 %v5786_v37, %v5786_v37  ;;  %v2789_v47 = vmul.f32 %v5789_v23, %v5789_v23 }
 0xb9d   : > { %4399 = vtanh.f32 %v2833_v59  ;;  %v2822_v24 = vadd.f32 %v2810_v34, %v5771_v17  ;;  %v2812_v48 = vmul.f32 0.044715, %v2800_v43 }
 0xb9e   : > { %v2799_v49 = vmul.f32 %v2787_v46, %v5786_v37  ;;  %v2801_v25 = vmul.f32 %v2789_v47, %v5789_v23 }
 0xb9f   : > { %v2834_v40 = vmul.f32 0.7978846, %v2822_v24  ;;  %v2824_v50 = vadd.f32 %v2812_v48, %v5778_v31 }
 0xba0   : > { %v2811_v61 = vmul.f32 0.044715, %v2799_v49  ;;  %v2813_v55 = vmul.f32 0.044715, %v2801_v25 }
 0xba1   : > { %4401 = vtanh.f32 %v2834_v40  ;;  %v2836_v39 = vmul.f32 0.7978846, %v2824_v50 }
 0xba2   : > { %v4386_v1 = vpop.eup %4385  ;;  %v2823_v2 = vadd.f32 %v2811_v61, %v5786_v37  ;;  %v2825_v3 = vadd.f32 %v2813_v55, %v5789_v23 }
 0xba3   : > { %v4388_v4 = vpop.eup %4387  ;;  %4403 = vtanh.f32 %v2836_v39  ;;  %v2850_v8 = vadd.f32 1.0, %v4386_v1 }
 0xba4   : > { %v4390_v57 = vpop.eup %4389  ;;  %v2835_v5 = vmul.f32 0.7978846, %v2823_v2  ;;  %v2837_v63 = vmul.f32 0.7978846, %v2825_v3  ;;  %v2852_v13 = vadd.f32 1.0, %v4388_v4 }
 0xba5   : > { %v4392_v6 = vpop.eup %4391  ;;  %v2851_v56 = vadd.f32 1.0, %v4390_v57  ;;  %v2862_v19 = vmul.f32 0.5, %v2850_v8 }
 0xba6   : > { %4405 = vtanh.f32 %v2835_v5  ;;  %v2853_v9 = vadd.f32 1.0, %v4392_v6  ;;  %v2864_v26 = vmul.f32 0.5, %v2852_v13 }
 0xba7   : > { %v4394_v7 = vpop.eup %4393  ;;  %4407 = vtanh.f32 %v2837_v63  ;;  %v2863_v16 = vmul.f32 0.5, %v2851_v56  ;;  %v2874_v36 = vmul.f32 %v2862_v19, %v5721_v28 }
 0xba8   : > { %v4396_v10 = vpop.eup %4395  ;;  %v2854_v15 = vadd.f32 1.0, %v4394_v7  ;;  %v2865_v21 = vmul.f32 0.5, %v2853_v9  ;;  %v2876_v46 = vmul.f32 %v2864_v26, %v5724_v29  ;;  %v3763_v7 = vld [vmem:[%s1020_s29] ss:$0 sm:$0xff] }
 0xba9   : > { %v4398_v11 = vpop.eup %4397  ;;  %v2856_v14 = vadd.f32 1.0, %v4396_v10  ;;  %v2875_v32 = vmul.f32 %v2863_v16, %v5731_v44 }
 0xbaa   : > { %v4400_v12 = vpop.eup %4399  ;;  %v2866_v62 = vmul.f32 0.5, %v2854_v15  ;;  %v2855_v0 = vadd.f32 1.0, %v4398_v11  ;;  %v2877_v38 = vmul.f32 %v2865_v21, %v5734_v54 }
 0xbab   : > { %v2868_v18 = vmul.f32 0.5, %v2856_v14  ;;  %v2857_v58 = vadd.f32 1.0, %v4400_v12 }
 0xbac   : > { %v2867_v27 = vmul.f32 0.5, %v2855_v0  ;;  %v2878_v30 = vmul.f32 %v2866_v62, %v5742_v41 }
 0xbad   : > { %v2869_v35 = vmul.f32 0.5, %v2857_v58  ;;  %v2880_v45 = vmul.f32 %v2868_v18, %v5745_v42 }
 0xbae   : > { %v4402_v22 = vpop.eup %4401  ;;  %v2879_v52 = vmul.f32 %v2867_v27, %v5754_v51  ;;  %v2886_v41 = vpack.c.bf16 %v2878_v30, %v2874_v36 }
 0xbaf   : > { %v2881_v59 = vmul.f32 %v2869_v35, %v5757_v33  ;;  %v2858_v34 = vadd.f32 1.0, %v4402_v22  ;;  %v2888_v49 = vpack.c.bf16 %v2880_v45, %v2876_v46 }
 0xbb0   : > { %v4404_v43 = vpop.eup %4403  ;;  %v2887_v47 = vpack.c.bf16 %v2879_v52, %v2875_v32 }
 0xbb1   : > { %v2889_v24 = vpack.c.bf16 %v2881_v59, %v2877_v38  ;;  %v2860_v48 = vadd.f32 1.0, %v4404_v43  ;;  %v2870_v44 = vmul.f32 0.5, %v2858_v34 }
 0xbb2   : > { %3189 = vmatprep.mubr.bf16.mxu1 %v2887_v47 }
 0xbb3   : > { %v4406_v42 = vpop.eup %4405  ;;  %3237 = vmatprep.mubr.bf16.mxu0 %v2889_v24  ;;  %3190 = vmatmul.mubr.bf16.vlgmr.msra.gmra.mxu1 %v2886_v41  ;;  %v2872_v54 = vmul.f32 0.5, %v2860_v48  ;;  %v2882_v29 = vmul.f32 %v2870_v44, %v5771_v17  ;;  %v3730_v17 = vld [vmem:[%s1017_s1] ss:$0 sm:$0xff]  ;;  %s6026_s1 = sld [smem:[#allocation30_spill]] }
 0xbb4   : > { %v4408_v51 = vpop.eup %4407  ;;  %3238 = vmatmul.mubr.bf16.vlgmr.msra.gmra.mxu0 %v2888_v49  ;;  %v2859_v28 = vadd.f32 1.0, %v4406_v42 }
 0xbb5   : > { %v2861_v25 = vadd.f32 1.0, %v4408_v51  ;;  %v2884_v61 = vmul.f32 %v2872_v54, %v5778_v31  ;;  %v2890_v2 = vpack.c.bf16 %v2882_v29, %v2882_v29 }
 0xbb6   : > { %v2871_v33 = vmul.f32 0.5, %v2859_v28 }
 0xbb7   : > { %v2873_v40 = vmul.f32 0.5, %v2861_v25  ;;  %v2892_v3 = vpack.c.bf16 %v2884_v61, %v2884_v61 }
 0xbb8   : > { %v2883_v50 = vmul.f32 %v2871_v33, %v5786_v37 }
 0xbb9   : > { %v2885_v55 = vmul.f32 %v2873_v40, %v5789_v23  ;;  %p3764_p0 = scmp.ne.s32.totalorder %s6026_s1, 1 }
 0xbba   : > { %v2891_v39 = vpack.c.bf16 %v2883_v50, %v2883_v50 }
 0xbbb   : > { %v2893_v1 = vpack.c.bf16 %v2885_v55, %v2885_v55 }
 0xbbc   : > { %3197 = vmatprep.mubr.bf16.mxu1 %v2891_v39 }
 0xbbd   : > { %3245 = vmatprep.mubr.bf16.mxu0 %v2893_v1  ;;  %3198 = vmatmul.mubr.bf16.gmra.mxu1 %v2890_v2 }
 0xbbe   : > { %3246 = vmatmul.mubr.bf16.gmra.mxu0 %v2892_v3 }
 0xc73   : > { %v3839_v4 = vpop.f32.mrf.mxu1 }
 0xc74   : > { %v3867_v57 = vpop.f32.mrf.mxu0 }
 0xc75   : > { %v3840_v37 = vpop.f32.mrf.mxu1 }
 0xc76   : > { %v3841_v31 = vadd.f32 %v3840_v37, %v3839_v4  ;;  %v3868_v5 = vpop.f32.mrf.mxu0 }
 0xc77   : > { %v3842_v23 = vpop.f32.mrf.mxu1  ;;  %v3869_v6 = vadd.f32 %v3868_v5, %v3867_v57 }
 0xc78   : > { %v3192_v63 = vadd.f32 %v3841_v31, %v3730_v17  ;;  %v3870_v56 = vpop.f32.mrf.mxu0 }
 0xc79   : > { %v3843_v8 = vpop.f32.mrf.mxu1 }
 0xc7a   : > { %v3240_v9 = vadd.f32 %v3869_v6, %v3192_v63  ;;  %v3844_v10 = vadd.f32 %v3843_v8, %v3842_v23  ;;  %v3871_v13 = vpop.f32.mrf.mxu0 }
 0xc7b   : > { %v3872_v14 = vadd.f32 %v3871_v13, %v3870_v56 }
 0xc7c   : > { %v3260_v15 = vmul.f32 %v3763_v7, %v3240_v9  ;;  %v3195_v11 = vadd.f32 %v3844_v10, %v3730_v17 }
 0xc7d   : > { %v3845_v12 = vpop.f32.mrf.mxu1 }
 0xc7e   : > { %v3263_v62 = vadd.f32 %v3260_v15, %v5614_v20  ;;  %v3243_v0 = vadd.f32 %v3872_v14, %v3195_v11  ;;  %v3873_v16 = vpop.f32.mrf.mxu0 }
 0xc7f   : > { %v3846_v19 = vpop.f32.mrf.mxu1 }
 0xc80   : > { %3266 = vst [vmem:[#allocation2 + $0x10] sm:$0xff] %v3263_v62  ;;  %v3261_v18 = vmul.f32 %v3763_v7, %v3243_v0  ;;  %v3847_v58 = vadd.f32 %v3846_v19, %v3845_v12  ;;  %v3874_v21 = vpop.f32.mrf.mxu0 }
 0xc81   : > { %v3848_v26 = vpop.f32.mrf.mxu1  ;;  %v3875_v35 = vadd.f32 %v3874_v21, %v3873_v16 }
 0xc82   : > { %v3264_v27 = vadd.f32 %v3261_v18, %v5619_v53  ;;  %v3200_v30 = vadd.f32 %v3847_v58, %v3730_v17  ;;  %v3876_v22 = vpop.f32.mrf.mxu0 }
 0xc83   : > { %v3849_v45 = vpop.f32.mrf.mxu1 }
 0xc84   : > { %3267 = vst [vmem:[#allocation2] sm:$0xff] %v3264_v27  ;;  %v3248_v32 = vadd.f32 %v3875_v35, %v3200_v30  ;;  %v3877_v52 = vpop.f32.mrf.mxu0 }
 0xc86   : > { %v3262_v36 = vmul.f32 %v3763_v7, %v3248_v32  ;;  %3272 = sbr.rel (%p3764_p0) target bundleno = 3213 (0xc8d), region = 148 }
 0xc88   : > { %v3265_v20 = vadd.f32 %v3262_v36, %v5616_v60 }
 0xc8a   : > { %3268 = vst [vmem:[#allocation2 + $0x8] sm:$0x1] %v3265_v20 }
 0xc8b   : > { %3273 = vst [vmem:[%s5347_s24] sm:$0xff] %v3263_v62  ;;  %3274 = vst [vmem:[%s5347_s24 + $0x8] sm:$0xff] %v3264_v27 }
 0xc8c   : > { %3275 = vst [vmem:[%s5347_s24 + $0x10] sm:$0x1] %v3265_v20 }
 0xc8d PF: > { %s6027_s17 = sld [smem:[#allocation34_spill]] }
 0xc8e   : > { %s6028_s0 = sld [smem:[#allocation26_spill]] }
 0xc8f   : > { %s6029_s30 = sld [smem:[#allocation27_spill]] }
 0xc90   : > { %s6030_s20 = sld [smem:[#allocation39_spill]] }
 0xc91   : > { %s6031_s21 = sld [smem:[#allocation28_spill]] }
 0xc92   : > { %s6032_s1 = sld [smem:[#allocation29_spill]] }
 0xc93   : > { %s43_s3 = sadd.s32 1, %s6027_s17   ;;  %s6033_s22 = sld [smem:[#allocation41_spill]] }
 0xc94   : > { %p40_p13 = scmp.ge.s32.totalorder %s43_s3, 6   ;;  %s6034_s2 = sld [smem:[#allocation32_spill]] }
 0xc95   : > { %s6035_s23 = sld [smem:[#allocation33_spill]] }
 0xc96   : > { %s6036_s24 = sld [smem:[#allocation37_spill]]  ;;  %42 = sbr.rel (!%p40_p13) target bundleno = 36 (0x24), region = 256 }
 0xc97   : > { %s6037_s25 = sld [smem:[#allocation40_spill]] }
 0xc9b   :  { %3297 = vsyncpa [#allocation4], 1 }
 0xc9c   :  { %3299 = vsyncpa [#allocation4 + $0x1], 1 }
 0xc9d   :  { %3300 = vsyncpa [#allocation6], 1 }
 0xc9e   :  { %3301 = vsyncpa [#allocation9], 1 }
 0xc9f   :  { %3302 = vsyncpa [#allocation12], 1 }
 0xca0   :  { %3304 = vsyncpa [#allocation12 + $0x1], 1 }
 0xca1   :  { %3305 = vsyncpa [#allocation15], 1 }
 0xca2   :  { %3307 = vsyncpa [#allocation15 + $0x1], 1 }
 0xca3   :  { %3308 = vsyncpa [#allocation18], 1 }
 0xca4   :  { %3310 = vsyncpa [#allocation18 + $0x1], 1 }

</bundles_post_ra>
